<compile_context>
chip_gen: v7x
topology: tpu7x:2x2x1
jax: 0.10.0
libtpu: 0.0.40
codegen_flags: <defaults>
</compile_context>

<pallas_src>
import functools

import jax
import jax.numpy as jnp
from jax.experimental import pallas as pl
from jax.experimental.pallas import tpu as pltpu


def _decoder_gru_kernel(h0_ref, *refs, with_ego, non_linear_output, sizes):
    """One batch block, full unrolled time recurrence.

    refs (in order):
      [ego_ref (Bb,T,I)]           only if with_ego
      wcat_ref  (I+H, 4H)          fused gate weight  [r | z | gi_n | gh_n]
      bgate_ref (1, 4H)            fused gate bias    [b_r_sum | b_z_sum | b_ih_n | b_hh_n]
      wout_ref  (H, I+P)           fused output weight [hidden_to_pred_input | hidden_to_pred]
      bout_ref  (1, I+P)
      fused_ref (Bb, T, I+H+P)     output slab [pred_inputs | h | pred]
    """
    H, I, P = sizes
    if with_ego:
        ego_ref, wcat_ref, bgate_ref, wout_ref, bout_ref, fused_ref = refs
    else:
        wcat_ref, bgate_ref, wout_ref, bout_ref, fused_ref = refs
        ego_ref = None

    Bb = h0_ref.shape[0]
    T = fused_ref.shape[1]

    # Loop-invariant weights; biases pre-broadcast once (JAX does not CSE
    # broadcast_in_dim, so do NOT leave this inside the time loop).
    w_cat = wcat_ref[...]
    w_out = wout_ref[...]
    b_gate = jnp.broadcast_to(bgate_ref[...], (Bb, 4 * H))
    b_out = jnp.broadcast_to(bout_ref[...], (Bb, I + P))
    wdt = w_cat.dtype  # f32 by default; bf16 if prepared that way

    # Recurrent carries live in vregs (values), not VMEM scratch.
    h = h0_ref[...].astype(jnp.float32)
    x = jnp.zeros((Bb, I), jnp.float32)

    # TODO(synk): for very large pred_timesteps switch to pl.loop(unroll=k)
    # with VMEM-scratch carries to bound live ranges / compile time.
    for t in range(T):  # T is static -> full unroll, all slices static.
        if with_ego:
            x = (ego_ref[:, t, :].astype(jnp.float32) + x) * 0.5

        # Single fused gate matmul:  [x | h] @ W_cat  ->  [r | z | gi_n | gh_n]
        xh = jnp.concatenate([x, h], axis=1)                       # (Bb, I+H)
        g = jnp.dot(xh.astype(wdt), w_cat,
                    preferred_element_type=jnp.float32) + b_gate    # (Bb, 4H)
        r = jax.nn.sigmoid(g[:, 0:H])
        z = jax.nn.sigmoid(g[:, H:2 * H])
        n = jnp.tanh(g[:, 2 * H:3 * H] + r * g[:, 3 * H:4 * H])
        h = (1.0 - z) * n + z * h                                   # new hidden

        # Fused output projections: [hidden_to_pred_input | hidden_to_pred]
        proj = jnp.dot(h.astype(wdt), w_out,
                       preferred_element_type=jnp.float32) + b_out  # (Bb, I+P)
        pred = proj[:, I:]
        if non_linear_output:
            pred = jnp.tanh(pred)

        # Single lane-fused store per step: [pred_inputs_t | h_t | pred_t].
        fused_ref[:, t, :] = jnp.concatenate([x, h, pred],
                                             axis=1).astype(fused_ref.dtype)

        # ReLU projection feeds step t+1.
        x = jnp.maximum(proj[:, 0:I], 0.0)


def prepare_decoder_gru_params(raw, *, weight_dtype=jnp.float32):
    """One-time conversion from PyTorch layout to the fused kernel layout.

    raw layout (PyTorch):
      w_ih (3H, I), w_hh (3H, H), b_ih (3H,), b_hh (3H,)  [gate order r, z, n]
      w_pi (H, I), b_pi (I,)   hidden_to_pred_input (already W^T)
      w_hp (H, P), b_hp (P,)   hidden_to_pred        (already W^T)

    Produces:
      w_cat  (I+H, 4H): cols [0:H]=r (x&h rows), [H:2H]=z (x&h rows),
                             [2H:3H]=gi_n (h rows zero), [3H:4H]=gh_n (x rows zero)
      b_gate (1, 4H):   [b_ih_r+b_hh_r | b_ih_z+b_hh_z | b_ih_n | b_hh_n]
      w_out  (H, I+P),  b_out (1, I+P)
    """
    w_ih = jnp.asarray(raw["w_ih"], jnp.float32)
    w_hh = jnp.asarray(raw["w_hh"], jnp.float32)
    b_ih = jnp.asarray(raw["b_ih"], jnp.float32)
    b_hh = jnp.asarray(raw["b_hh"], jnp.float32)
    w_pi = jnp.asarray(raw["w_pi"], jnp.float32)
    b_pi = jnp.asarray(raw["b_pi"], jnp.float32)
    w_hp = jnp.asarray(raw["w_hp"], jnp.float32)
    b_hp = jnp.asarray(raw["b_hp"], jnp.float32)

    H = w_hh.shape[1]
    I = w_ih.shape[1]
    P = w_hp.shape[1]

    wi_r, wi_z, wi_n = w_ih[0:H], w_ih[H:2 * H], w_ih[2 * H:3 * H]   # (H, I)
    wh_r, wh_z, wh_n = w_hh[0:H], w_hh[H:2 * H], w_hh[2 * H:3 * H]   # (H, H)

    col_r = jnp.concatenate([wi_r.T, wh_r.T], axis=0)                    # (I+H, H)
    col_z = jnp.concatenate([wi_z.T, wh_z.T], axis=0)                    # (I+H, H)
    col_gn = jnp.concatenate([wi_n.T, jnp.zeros((H, H), jnp.float32)], 0)  # h rows zero
    col_hn = jnp.concatenate([jnp.zeros((I, H), jnp.float32), wh_n.T], 0)  # x rows zero
    w_cat = jnp.concatenate([col_r, col_z, col_gn, col_hn], axis=1)      # (I+H, 4H)

    b_gate = jnp.concatenate([
        b_ih[0:H] + b_hh[0:H],            # r (pre-summed)
        b_ih[H:2 * H] + b_hh[H:2 * H],    # z (pre-summed)
        b_ih[2 * H:3 * H],                # gi_n
        b_hh[2 * H:3 * H],                # gh_n
    ]).reshape(1, 4 * H)

    w_out = jnp.concatenate([w_pi, w_hp], axis=1)                        # (H, I+P)
    b_out = jnp.concatenate([b_pi, b_hp]).reshape(1, I + P)

    return {
        "w_cat": w_cat.astype(weight_dtype),
        "b_gate": b_gate,
        "w_out": w_out.astype(weight_dtype),
        "b_out": b_out,
        "sizes": (H, I, P),
    }


def decoder_gru_forward(h, embedded_ego_pred, prep, *, pred_timesteps,
                        with_ego=True, non_linear_output=True,
                        batch_block=None, core_parallel=False):
    """Pallas implementation of DecoderGRU.forward.

    h:                 (B, H)
    embedded_ego_pred: (B, T, I) batch-major (may be None when with_ego=False)
    prep:              output of prepare_decoder_gru_params()
    returns (output (B,T,P), all_pred_h (B,T,H), all_pred_inputs (B,T,I))
    """
    B, H = h.shape
    Hp, I, P = prep["sizes"]
    assert Hp == H, "hidden size mismatch"
    T = pred_timesteps
    F = I + H + P

    if with_ego:
        assert embedded_ego_pred.shape == (B, T, I), "embedded_ego_pred shape mismatch"

    # Pad batch to a full f32 sublane group (multiple of 8).
    Bp = max(8, ((B + 7) // 8) * 8)
    if Bp != B:
        h = jnp.pad(h, ((0, Bp - B), (0, 0)))
        if with_ego:
            embedded_ego_pred = jnp.pad(embedded_ego_pred,
                                        ((0, Bp - B), (0, 0), (0, 0)))

    # Optional batch blocking (e.g. batch_block = Bp // 2 + core_parallel=True
    # to light up both v7x TensorCores).  For 1-TC chips keep nb == 1.
    bb = Bp if batch_block is None else batch_block
    assert Bp % bb == 0 and bb % 8 == 0, "batch_block must divide padded B and be a multiple of 8"
    nb = Bp // bb

    def const_spec(shape):
        zero = (0,) * len(shape)
        return pl.BlockSpec(shape, lambda b, _z=zero: _z)

    in_specs = [pl.BlockSpec((bb, H), lambda b: (b, 0))]
    args = [h]
    if with_ego:
        in_specs.append(pl.BlockSpec((bb, T, I), lambda b: (b, 0, 0)))  # batch-major, no transpose
        args.append(embedded_ego_pred)
    in_specs += [
        const_spec(prep["w_cat"].shape),
        const_spec(prep["b_gate"].shape),
        const_spec(prep["w_out"].shape),
        const_spec(prep["b_out"].shape),
    ]
    args += [prep["w_cat"], prep["b_gate"], prep["w_out"], prep["b_out"]]

    # Explicit VMEM budget (double-buffered blocks + weights), clamped so it is
    # valid on v5e (16 MiB scoped default) and v7x (64 MiB physical).
    bytes_per = 4
    est = 2 * bb * T * F * bytes_per                       # fused output block
    if with_ego:
        est += 2 * bb * T * I * bytes_per                  # ego block
    est += 2 * bb * H * bytes_per                          # h0 block
    est += 2 * bytes_per * (prep["w_cat"].size + prep["b_gate"].size
                            + prep["w_out"].size + prep["b_out"].size)
    vmem_limit = int(min(64 * 1024 * 1024, max(16 * 1024 * 1024, 2 * est)))

    dim_sem = (pltpu.CORE_PARALLEL,) if core_parallel else ("parallel",)

    kernel = functools.partial(_decoder_gru_kernel,
                               with_ego=with_ego,
                               non_linear_output=non_linear_output,
                               sizes=(H, I, P))

    fused = pl.pallas_call(
        kernel,
        out_shape=jax.ShapeDtypeStruct((Bp, T, F), jnp.float32),
        grid_spec=pltpu.PrefetchScalarGridSpec(
            num_scalar_prefetch=0,
            grid=(nb,),
            in_specs=in_specs,
            out_specs=pl.BlockSpec((bb, T, F), lambda b: (b, 0, 0)),
        ),
        compiler_params=pltpu.CompilerParams(
            dimension_semantics=dim_sem,
            vmem_limit_bytes=vmem_limit),
    )(*args)

    fused = fused[:B]
    # Split the fused slab back to the PyTorch API (consumers that can take
    # the fused (B, T, I+H+P) layout should use it directly and skip this).
    all_pred_inputs = fused[..., 0:I]
    all_pred_h = fused[..., I:I + H]
    output = fused[..., I + H:]
    return output, all_pred_h, all_pred_inputs


def _reference_forward(h, ego, params, *, pred_timesteps, with_ego, non_linear_output):
    """Pure-JAX mirror of the PyTorch forward (for verification)."""
    B, H = h.shape
    I = params["w_pi"].shape[1]
    w_ih, w_hh, b_ih, b_hh = params["w_ih"], params["w_hh"], params["b_ih"], params["b_hh"]
    outs, allh, allin = [], [], []
    x = jnp.zeros((B, I), jnp.float32)
    for i in range(pred_timesteps):
        if with_ego:
            x = (ego[:, i, :] + x) / 2.0
        allin.append(x)
        gi = x @ w_ih.T + b_ih
        gh = h @ w_hh.T + b_hh
        r = jax.nn.sigmoid(gi[:, :H] + gh[:, :H])
        z = jax.nn.sigmoid(gi[:, H:2 * H] + gh[:, H:2 * H])
        n = jnp.tanh(gi[:, 2 * H:] + r * gh[:, 2 * H:])
        h = (1 - z) * n + z * h
        x = jax.nn.relu(h @ params["w_pi"] + params["b_pi"])
        allh.append(h)
        o = h @ params["w_hp"] + params["b_hp"]
        if non_linear_output:
            o = jnp.tanh(o)
        outs.append(o)
    return (jnp.stack(outs, 1), jnp.stack(allh, 1), jnp.stack(allin, 1))


if __name__ == "__main__":
    # args-equivalent config (small, deterministic)
    B = 4
    DEC_HIDDEN = 32          # args.dec_hidden_size
    PRED_INPUT = 16          # args.predictor_input_size
    PRED_DIM = 8             # args.pred_dim
    T = 6                    # args.pred_timesteps
    WITH_EGO = True          # args.with_ego
    NON_LINEAR = True        # args.non_linear_output

    key = jax.random.PRNGKey(0)
    ks = jax.random.split(key, 12)
    s = 0.1
    params = {
        # GRUCell params, PyTorch layout: (3H, in) / (3H, H) / (3H,)
        "w_ih": s * jax.random.normal(ks[0], (3 * DEC_HIDDEN, PRED_INPUT), jnp.float32),
        "w_hh": s * jax.random.normal(ks[1], (3 * DEC_HIDDEN, DEC_HIDDEN), jnp.float32),
        "b_ih": s * jax.random.normal(ks[2], (3 * DEC_HIDDEN,), jnp.float32),
        "b_hh": s * jax.random.normal(ks[3], (3 * DEC_HIDDEN,), jnp.float32),
        # hidden_to_pred_input: Linear(H -> I), stored pre-transposed (H, I)
        "w_pi": s * jax.random.normal(ks[4], (DEC_HIDDEN, PRED_INPUT), jnp.float32),
        "b_pi": s * jax.random.normal(ks[5], (PRED_INPUT,), jnp.float32),
        # hidden_to_pred: Linear(H -> P), stored pre-transposed (H, P)
        "w_hp": s * jax.random.normal(ks[6], (DEC_HIDDEN, PRED_DIM), jnp.float32),
        "b_hp": s * jax.random.normal(ks[7], (PRED_DIM,), jnp.float32),
    }

    h0 = jax.random.normal(ks[8], (B, DEC_HIDDEN), jnp.float32)
    embedded_ego_pred = jax.random.normal(ks[9], (B, T, PRED_INPUT), jnp.float32)

    prep = prepare_decoder_gru_params(params)   # one-time weight fusion/transpose

    out, all_h, all_in = decoder_gru_forward(
        h0, embedded_ego_pred, prep,
        pred_timesteps=T, with_ego=WITH_EGO, non_linear_output=NON_LINEAR)
    jax.block_until_ready((out, all_h, all_in))

    ref_out, ref_h, ref_in = _reference_forward(
        h0, embedded_ego_pred, params,
        pred_timesteps=T, with_ego=WITH_EGO, non_linear_output=NON_LINEAR)

    assert out.shape == (B, T, PRED_DIM)
    assert all_h.shape == (B, T, DEC_HIDDEN)
    assert all_in.shape == (B, T, PRED_INPUT)
    assert jnp.allclose(out, ref_out, atol=1e-5), "output mismatch"
    assert jnp.allclose(all_h, ref_h, atol=1e-5), "hidden mismatch"
    assert jnp.allclose(all_in, ref_in, atol=1e-5), "pred_inputs mismatch"

    print("KERNEL_OK")
</pallas_src>

<mosaic_0001>
module attributes {stable_mosaic.version = 11 : i64} {
  func.func @_decoder_gru_kernel(%arg0: i32, %arg1: memref<8x32xf32, #tpu.memory_space<vmem>>, %arg2: memref<8x6x16xf32, #tpu.memory_space<vmem>>, %arg3: memref<48x128xf32, #tpu.memory_space<vmem>>, %arg4: memref<1x128xf32, #tpu.memory_space<vmem>>, %arg5: memref<32x24xf32, #tpu.memory_space<vmem>>, %arg6: memref<1x24xf32, #tpu.memory_space<vmem>>, %arg7: memref<8x6x56xf32, #tpu.memory_space<vmem>>) attributes {dimension_semantics = [#tpu.dimension_semantics<parallel>], iteration_bounds = array<i64: 1>, scalar_prefetch = 0 : i64, scratch_operands = 0 : i64, tpu.core_type = #tpu.core_type<tc>, window_params = [{transform_indices = @transform_0, window_bounds = array<i64: 8, 32>}, {transform_indices = @transform_1, window_bounds = array<i64: 8, 6, 16>}, {pipeline_mode = #tpu.pipeline_mode<synchronous>, transform_indices = @transform_2, window_bounds = array<i64: 48, 128>}, {pipeline_mode = #tpu.pipeline_mode<synchronous>, transform_indices = @transform_3, window_bounds = array<i64: 1, 128>}, {pipeline_mode = #tpu.pipeline_mode<synchronous>, transform_indices = @transform_4, window_bounds = array<i64: 32, 24>}, {pipeline_mode = #tpu.pipeline_mode<synchronous>, transform_indices = @transform_5, window_bounds = array<i64: 1, 24>}, {transform_indices = @transform_6, window_bounds = array<i64: 8, 6, 56>}]} {
    %c0 = arith.constant 0 : index
    %c0_0 = arith.constant 0 : index
    %0 = vector.load %arg3[%c0, %c0_0] : memref<48x128xf32, #tpu.memory_space<vmem>>, vector<48x128xf32>
    %c0_1 = arith.constant 0 : index
    %c0_2 = arith.constant 0 : index
    %1 = vector.load %arg5[%c0_1, %c0_2] : memref<32x24xf32, #tpu.memory_space<vmem>>, vector<32x24xf32>
    %c0_3 = arith.constant 0 : index
    %c0_4 = arith.constant 0 : index
    %2 = vector.load %arg4[%c0_3, %c0_4] : memref<1x128xf32, #tpu.memory_space<vmem>>, vector<1x128xf32>
    %3 = vector.shape_cast %2 : vector<1x128xf32> to vector<1x128xf32>
    %4 = vector.broadcast %3 : vector<1x128xf32> to vector<8x128xf32>
    %c0_5 = arith.constant 0 : index
    %c0_6 = arith.constant 0 : index
    %5 = vector.load %arg6[%c0_5, %c0_6] : memref<1x24xf32, #tpu.memory_space<vmem>>, vector<1x24xf32>
    %6 = vector.shape_cast %5 : vector<1x24xf32> to vector<1x24xf32>
    %7 = vector.broadcast %6 : vector<1x24xf32> to vector<8x24xf32>
    %c0_7 = arith.constant 0 : index
    %c0_8 = arith.constant 0 : index
    %8 = vector.load %arg1[%c0_7, %c0_8] : memref<8x32xf32, #tpu.memory_space<vmem>>, vector<8x32xf32>
    %cst = arith.constant 0.000000e+00 : f32
    %9 = vector.broadcast %cst : f32 to vector<8x16xf32>
    %c0_9 = arith.constant 0 : index
    %c0_10 = arith.constant 0 : index
    %c0_11 = arith.constant 0 : index
    %10 = vector.load %arg2[%c0_9, %c0_10, %c0_11] : memref<8x6x16xf32, #tpu.memory_space<vmem>>, vector<8x1x16xf32>
    %11 = vector.shape_cast %10 : vector<8x1x16xf32> to vector<8x16xf32>
    %12 = arith.addf %11, %9 : vector<8x16xf32>
    %cst_12 = arith.constant 5.000000e-01 : f32
    %13 = vector.broadcast %cst_12 : f32 to vector<8x16xf32>
    %14 = arith.mulf %12, %13 : vector<8x16xf32>
    %15 = tpu.concatenate %14, %8 in 1 : vector<8x16xf32>, vector<8x32xf32> -> vector<8x48xf32>
    %cst_13 = arith.constant dense<0.000000e+00> : vector<8x128xf32>
    %16 = tpu.matmul %15, %0, %cst_13 {dimension_numbers = #tpu.dot_dimension_numbers<[1], [0], [0], [1], [0, 0, 1, 1], [], []>} : vector<8x48xf32>, vector<48x128xf32>, vector<8x128xf32> -> vector<8x128xf32>
    %17 = arith.addf %16, %4 : vector<8x128xf32>
    %18 = vector.extract_strided_slice %17 {offsets = [0, 0], sizes = [8, 32], strides = [1, 1]} : vector<8x128xf32> to vector<8x32xf32>
    %19 = arith.negf %18 : vector<8x32xf32>
    %20 = math.exp %19 : vector<8x32xf32>
    %cst_14 = arith.constant 1.000000e+00 : f32
    %21 = vector.broadcast %cst_14 : f32 to vector<8x32xf32>
    %22 = arith.addf %21, %20 : vector<8x32xf32>
    %23 = arith.divf %21, %22 : vector<8x32xf32>
    %24 = vector.extract_strided_slice %17 {offsets = [0, 32], sizes = [8, 32], strides = [1, 1]} : vector<8x128xf32> to vector<8x32xf32>
    %25 = arith.negf %24 : vector<8x32xf32>
    %26 = math.exp %25 : vector<8x32xf32>
    %cst_15 = arith.constant 1.000000e+00 : f32
    %27 = vector.broadcast %cst_15 : f32 to vector<8x32xf32>
    %28 = arith.addf %27, %26 : vector<8x32xf32>
    %29 = arith.divf %27, %28 : vector<8x32xf32>
    %30 = vector.extract_strided_slice %17 {offsets = [0, 64], sizes = [8, 32], strides = [1, 1]} : vector<8x128xf32> to vector<8x32xf32>
    %31 = vector.extract_strided_slice %17 {offsets = [0, 96], sizes = [8, 32], strides = [1, 1]} : vector<8x128xf32> to vector<8x32xf32>
    %32 = arith.mulf %23, %31 : vector<8x32xf32>
    %33 = arith.addf %30, %32 : vector<8x32xf32>
    %34 = math.tanh %33 : vector<8x32xf32>
    %cst_16 = arith.constant 1.000000e+00 : f32
    %35 = vector.broadcast %cst_16 : f32 to vector<8x32xf32>
    %36 = arith.subf %35, %29 : vector<8x32xf32>
    %37 = arith.mulf %36, %34 : vector<8x32xf32>
    %38 = arith.mulf %29, %8 : vector<8x32xf32>
    %39 = arith.addf %37, %38 : vector<8x32xf32>
    %cst_17 = arith.constant dense<0.000000e+00> : vector<8x24xf32>
    %40 = tpu.matmul %39, %1, %cst_17 {dimension_numbers = #tpu.dot_dimension_numbers<[1], [0], [0], [1], [0, 0, 1, 1], [], []>} : vector<8x32xf32>, vector<32x24xf32>, vector<8x24xf32> -> vector<8x24xf32>
    %41 = arith.addf %40, %7 : vector<8x24xf32>
    %42 = vector.extract_strided_slice %41 {offsets = [0, 16], sizes = [8, 8], strides = [1, 1]} : vector<8x24xf32> to vector<8x8xf32>
    %43 = math.tanh %42 : vector<8x8xf32>
    %44 = tpu.concatenate %14, %39, %43 in 1 : vector<8x16xf32>, vector<8x32xf32>, vector<8x8xf32> -> vector<8x56xf32>
    %c0_18 = arith.constant 0 : index
    %c0_19 = arith.constant 0 : index
    %c0_20 = arith.constant 0 : index
    %45 = vector.load %arg7[%c0_18, %c0_19, %c0_20] : memref<8x6x56xf32, #tpu.memory_space<vmem>>, vector<8x1x56xf32>
    %46 = vector.shape_cast %45 : vector<8x1x56xf32> to vector<8x56xf32>
    %47 = vector.shape_cast %44 : vector<8x56xf32> to vector<8x1x56xf32>
    tpu.vector_store %arg7[%c0_18, %c0_19, %c0_20], %47 {strides = array<i32>} : memref<8x6x56xf32, #tpu.memory_space<vmem>>, vector<8x1x56xf32>,
    %48 = vector.extract_strided_slice %41 {offsets = [0, 0], sizes = [8, 16], strides = [1, 1]} : vector<8x24xf32> to vector<8x16xf32>
    %cst_21 = arith.constant 0.000000e+00 : f32
    %49 = vector.broadcast %cst_21 : f32 to vector<8x16xf32>
    %50 = arith.maximumf %48, %49 : vector<8x16xf32>
    %c0_22 = arith.constant 0 : index
    %c1 = arith.constant 1 : index
    %c0_23 = arith.constant 0 : index
    %51 = vector.load %arg2[%c0_22, %c1, %c0_23] : memref<8x6x16xf32, #tpu.memory_space<vmem>>, vector<8x1x16xf32>
    %52 = vector.shape_cast %51 : vector<8x1x16xf32> to vector<8x16xf32>
    %53 = arith.addf %52, %50 : vector<8x16xf32>
    %cst_24 = arith.constant 5.000000e-01 : f32
    %54 = vector.broadcast %cst_24 : f32 to vector<8x16xf32>
    %55 = arith.mulf %53, %54 : vector<8x16xf32>
    %56 = tpu.concatenate %55, %39 in 1 : vector<8x16xf32>, vector<8x32xf32> -> vector<8x48xf32>
    %cst_25 = arith.constant dense<0.000000e+00> : vector<8x128xf32>
    %57 = tpu.matmul %56, %0, %cst_25 {dimension_numbers = #tpu.dot_dimension_numbers<[1], [0], [0], [1], [0, 0, 1, 1], [], []>} : vector<8x48xf32>, vector<48x128xf32>, vector<8x128xf32> -> vector<8x128xf32>
    %58 = arith.addf %57, %4 : vector<8x128xf32>
    %59 = vector.extract_strided_slice %58 {offsets = [0, 0], sizes = [8, 32], strides = [1, 1]} : vector<8x128xf32> to vector<8x32xf32>
    %60 = arith.negf %59 : vector<8x32xf32>
    %61 = math.exp %60 : vector<8x32xf32>
    %cst_26 = arith.constant 1.000000e+00 : f32
    %62 = vector.broadcast %cst_26 : f32 to vector<8x32xf32>
    %63 = arith.addf %62, %61 : vector<8x32xf32>
    %64 = arith.divf %62, %63 : vector<8x32xf32>
    %65 = vector.extract_strided_slice %58 {offsets = [0, 32], sizes = [8, 32], strides = [1, 1]} : vector<8x128xf32> to vector<8x32xf32>
    %66 = arith.negf %65 : vector<8x32xf32>
    %67 = math.exp %66 : vector<8x32xf32>
    %cst_27 = arith.constant 1.000000e+00 : f32
    %68 = vector.broadcast %cst_27 : f32 to vector<8x32xf32>
    %69 = arith.addf %68, %67 : vector<8x32xf32>
    %70 = arith.divf %68, %69 : vector<8x32xf32>
    %71 = vector.extract_strided_slice %58 {offsets = [0, 64], sizes = [8, 32], strides = [1, 1]} : vector<8x128xf32> to vector<8x32xf32>
    %72 = vector.extract_strided_slice %58 {offsets = [0, 96], sizes = [8, 32], strides = [1, 1]} : vector<8x128xf32> to vector<8x32xf32>
    %73 = arith.mulf %64, %72 : vector<8x32xf32>
    %74 = arith.addf %71, %73 : vector<8x32xf32>
    %75 = math.tanh %74 : vector<8x32xf32>
    %cst_28 = arith.constant 1.000000e+00 : f32
    %76 = vector.broadcast %cst_28 : f32 to vector<8x32xf32>
    %77 = arith.subf %76, %70 : vector<8x32xf32>
    %78 = arith.mulf %77, %75 : vector<8x32xf32>
    %79 = arith.mulf %70, %39 : vector<8x32xf32>
    %80 = arith.addf %78, %79 : vector<8x32xf32>
    %cst_29 = arith.constant dense<0.000000e+00> : vector<8x24xf32>
    %81 = tpu.matmul %80, %1, %cst_29 {dimension_numbers = #tpu.dot_dimension_numbers<[1], [0], [0], [1], [0, 0, 1, 1], [], []>} : vector<8x32xf32>, vector<32x24xf32>, vector<8x24xf32> -> vector<8x24xf32>
    %82 = arith.addf %81, %7 : vector<8x24xf32>
    %83 = vector.extract_strided_slice %82 {offsets = [0, 16], sizes = [8, 8], strides = [1, 1]} : vector<8x24xf32> to vector<8x8xf32>
    %84 = math.tanh %83 : vector<8x8xf32>
    %85 = tpu.concatenate %55, %80, %84 in 1 : vector<8x16xf32>, vector<8x32xf32>, vector<8x8xf32> -> vector<8x56xf32>
    %c0_30 = arith.constant 0 : index
    %c1_31 = arith.constant 1 : index
    %c0_32 = arith.constant 0 : index
    %86 = vector.load %arg7[%c0_30, %c1_31, %c0_32] : memref<8x6x56xf32, #tpu.memory_space<vmem>>, vector<8x1x56xf32>
    %87 = vector.shape_cast %86 : vector<8x1x56xf32> to vector<8x56xf32>
    %88 = vector.shape_cast %85 : vector<8x56xf32> to vector<8x1x56xf32>
    tpu.vector_store %arg7[%c0_30, %c1_31, %c0_32], %88 {strides = array<i32>} : memref<8x6x56xf32, #tpu.memory_space<vmem>>, vector<8x1x56xf32>,
    %89 = vector.extract_strided_slice %82 {offsets = [0, 0], sizes = [8, 16], strides = [1, 1]} : vector<8x24xf32> to vector<8x16xf32>
    %cst_33 = arith.constant 0.000000e+00 : f32
    %90 = vector.broadcast %cst_33 : f32 to vector<8x16xf32>
    %91 = arith.maximumf %89, %90 : vector<8x16xf32>
    %c0_34 = arith.constant 0 : index
    %c2 = arith.constant 2 : index
    %c0_35 = arith.constant 0 : index
    %92 = vector.load %arg2[%c0_34, %c2, %c0_35] : memref<8x6x16xf32, #tpu.memory_space<vmem>>, vector<8x1x16xf32>
    %93 = vector.shape_cast %92 : vector<8x1x16xf32> to vector<8x16xf32>
    %94 = arith.addf %93, %91 : vector<8x16xf32>
    %cst_36 = arith.constant 5.000000e-01 : f32
    %95 = vector.broadcast %cst_36 : f32 to vector<8x16xf32>
    %96 = arith.mulf %94, %95 : vector<8x16xf32>
    %97 = tpu.concatenate %96, %80 in 1 : vector<8x16xf32>, vector<8x32xf32> -> vector<8x48xf32>
    %cst_37 = arith.constant dense<0.000000e+00> : vector<8x128xf32>
    %98 = tpu.matmul %97, %0, %cst_37 {dimension_numbers = #tpu.dot_dimension_numbers<[1], [0], [0], [1], [0, 0, 1, 1], [], []>} : vector<8x48xf32>, vector<48x128xf32>, vector<8x128xf32> -> vector<8x128xf32>
    %99 = arith.addf %98, %4 : vector<8x128xf32>
    %100 = vector.extract_strided_slice %99 {offsets = [0, 0], sizes = [8, 32], strides = [1, 1]} : vector<8x128xf32> to vector<8x32xf32>
    %101 = arith.negf %100 : vector<8x32xf32>
    %102 = math.exp %101 : vector<8x32xf32>
    %cst_38 = arith.constant 1.000000e+00 : f32
    %103 = vector.broadcast %cst_38 : f32 to vector<8x32xf32>
    %104 = arith.addf %103, %102 : vector<8x32xf32>
    %105 = arith.divf %103, %104 : vector<8x32xf32>
    %106 = vector.extract_strided_slice %99 {offsets = [0, 32], sizes = [8, 32], strides = [1, 1]} : vector<8x128xf32> to vector<8x32xf32>
    %107 = arith.negf %106 : vector<8x32xf32>
    %108 = math.exp %107 : vector<8x32xf32>
    %cst_39 = arith.constant 1.000000e+00 : f32
    %109 = vector.broadcast %cst_39 : f32 to vector<8x32xf32>
    %110 = arith.addf %109, %108 : vector<8x32xf32>
    %111 = arith.divf %109, %110 : vector<8x32xf32>
    %112 = vector.extract_strided_slice %99 {offsets = [0, 64], sizes = [8, 32], strides = [1, 1]} : vector<8x128xf32> to vector<8x32xf32>
    %113 = vector.extract_strided_slice %99 {offsets = [0, 96], sizes = [8, 32], strides = [1, 1]} : vector<8x128xf32> to vector<8x32xf32>
    %114 = arith.mulf %105, %113 : vector<8x32xf32>
    %115 = arith.addf %112, %114 : vector<8x32xf32>
    %116 = math.tanh %115 : vector<8x32xf32>
    %cst_40 = arith.constant 1.000000e+00 : f32
    %117 = vector.broadcast %cst_40 : f32 to vector<8x32xf32>
    %118 = arith.subf %117, %111 : vector<8x32xf32>
    %119 = arith.mulf %118, %116 : vector<8x32xf32>
    %120 = arith.mulf %111, %80 : vector<8x32xf32>
    %121 = arith.addf %119, %120 : vector<8x32xf32>
    %cst_41 = arith.constant dense<0.000000e+00> : vector<8x24xf32>
    %122 = tpu.matmul %121, %1, %cst_41 {dimension_numbers = #tpu.dot_dimension_numbers<[1], [0], [0], [1], [0, 0, 1, 1], [], []>} : vector<8x32xf32>, vector<32x24xf32>, vector<8x24xf32> -> vector<8x24xf32>
    %123 = arith.addf %122, %7 : vector<8x24xf32>
    %124 = vector.extract_strided_slice %123 {offsets = [0, 16], sizes = [8, 8], strides = [1, 1]} : vector<8x24xf32> to vector<8x8xf32>
    %125 = math.tanh %124 : vector<8x8xf32>
    %126 = tpu.concatenate %96, %121, %125 in 1 : vector<8x16xf32>, vector<8x32xf32>, vector<8x8xf32> -> vector<8x56xf32>
    %c0_42 = arith.constant 0 : index
    %c2_43 = arith.constant 2 : index
    %c0_44 = arith.constant 0 : index
    %127 = vector.load %arg7[%c0_42, %c2_43, %c0_44] : memref<8x6x56xf32, #tpu.memory_space<vmem>>, vector<8x1x56xf32>
    %128 = vector.shape_cast %127 : vector<8x1x56xf32> to vector<8x56xf32>
    %129 = vector.shape_cast %126 : vector<8x56xf32> to vector<8x1x56xf32>
    tpu.vector_store %arg7[%c0_42, %c2_43, %c0_44], %129 {strides = array<i32>} : memref<8x6x56xf32, #tpu.memory_space<vmem>>, vector<8x1x56xf32>,
    %130 = vector.extract_strided_slice %123 {offsets = [0, 0], sizes = [8, 16], strides = [1, 1]} : vector<8x24xf32> to vector<8x16xf32>
    %cst_45 = arith.constant 0.000000e+00 : f32
    %131 = vector.broadcast %cst_45 : f32 to vector<8x16xf32>
    %132 = arith.maximumf %130, %131 : vector<8x16xf32>
    %c0_46 = arith.constant 0 : index
    %c3 = arith.constant 3 : index
    %c0_47 = arith.constant 0 : index
    %133 = vector.load %arg2[%c0_46, %c3, %c0_47] : memref<8x6x16xf32, #tpu.memory_space<vmem>>, vector<8x1x16xf32>
    %134 = vector.shape_cast %133 : vector<8x1x16xf32> to vector<8x16xf32>
    %135 = arith.addf %134, %132 : vector<8x16xf32>
    %cst_48 = arith.constant 5.000000e-01 : f32
    %136 = vector.broadcast %cst_48 : f32 to vector<8x16xf32>
    %137 = arith.mulf %135, %136 : vector<8x16xf32>
    %138 = tpu.concatenate %137, %121 in 1 : vector<8x16xf32>, vector<8x32xf32> -> vector<8x48xf32>
    %cst_49 = arith.constant dense<0.000000e+00> : vector<8x128xf32>
    %139 = tpu.matmul %138, %0, %cst_49 {dimension_numbers = #tpu.dot_dimension_numbers<[1], [0], [0], [1], [0, 0, 1, 1], [], []>} : vector<8x48xf32>, vector<48x128xf32>, vector<8x128xf32> -> vector<8x128xf32>
    %140 = arith.addf %139, %4 : vector<8x128xf32>
    %141 = vector.extract_strided_slice %140 {offsets = [0, 0], sizes = [8, 32], strides = [1, 1]} : vector<8x128xf32> to vector<8x32xf32>
    %142 = arith.negf %141 : vector<8x32xf32>
    %143 = math.exp %142 : vector<8x32xf32>
    %cst_50 = arith.constant 1.000000e+00 : f32
    %144 = vector.broadcast %cst_50 : f32 to vector<8x32xf32>
    %145 = arith.addf %144, %143 : vector<8x32xf32>
    %146 = arith.divf %144, %145 : vector<8x32xf32>
    %147 = vector.extract_strided_slice %140 {offsets = [0, 32], sizes = [8, 32], strides = [1, 1]} : vector<8x128xf32> to vector<8x32xf32>
    %148 = arith.negf %147 : vector<8x32xf32>
    %149 = math.exp %148 : vector<8x32xf32>
    %cst_51 = arith.constant 1.000000e+00 : f32
    %150 = vector.broadcast %cst_51 : f32 to vector<8x32xf32>
    %151 = arith.addf %150, %149 : vector<8x32xf32>
    %152 = arith.divf %150, %151 : vector<8x32xf32>
    %153 = vector.extract_strided_slice %140 {offsets = [0, 64], sizes = [8, 32], strides = [1, 1]} : vector<8x128xf32> to vector<8x32xf32>
    %154 = vector.extract_strided_slice %140 {offsets = [0, 96], sizes = [8, 32], strides = [1, 1]} : vector<8x128xf32> to vector<8x32xf32>
    %155 = arith.mulf %146, %154 : vector<8x32xf32>
    %156 = arith.addf %153, %155 : vector<8x32xf32>
    %157 = math.tanh %156 : vector<8x32xf32>
    %cst_52 = arith.constant 1.000000e+00 : f32
    %158 = vector.broadcast %cst_52 : f32 to vector<8x32xf32>
    %159 = arith.subf %158, %152 : vector<8x32xf32>
    %160 = arith.mulf %159, %157 : vector<8x32xf32>
    %161 = arith.mulf %152, %121 : vector<8x32xf32>
    %162 = arith.addf %160, %161 : vector<8x32xf32>
    %cst_53 = arith.constant dense<0.000000e+00> : vector<8x24xf32>
    %163 = tpu.matmul %162, %1, %cst_53 {dimension_numbers = #tpu.dot_dimension_numbers<[1], [0], [0], [1], [0, 0, 1, 1], [], []>} : vector<8x32xf32>, vector<32x24xf32>, vector<8x24xf32> -> vector<8x24xf32>
    %164 = arith.addf %163, %7 : vector<8x24xf32>
    %165 = vector.extract_strided_slice %164 {offsets = [0, 16], sizes = [8, 8], strides = [1, 1]} : vector<8x24xf32> to vector<8x8xf32>
    %166 = math.tanh %165 : vector<8x8xf32>
    %167 = tpu.concatenate %137, %162, %166 in 1 : vector<8x16xf32>, vector<8x32xf32>, vector<8x8xf32> -> vector<8x56xf32>
    %c0_54 = arith.constant 0 : index
    %c3_55 = arith.constant 3 : index
    %c0_56 = arith.constant 0 : index
    %168 = vector.load %arg7[%c0_54, %c3_55, %c0_56] : memref<8x6x56xf32, #tpu.memory_space<vmem>>, vector<8x1x56xf32>
    %169 = vector.shape_cast %168 : vector<8x1x56xf32> to vector<8x56xf32>
    %170 = vector.shape_cast %167 : vector<8x56xf32> to vector<8x1x56xf32>
    tpu.vector_store %arg7[%c0_54, %c3_55, %c0_56], %170 {strides = array<i32>} : memref<8x6x56xf32, #tpu.memory_space<vmem>>, vector<8x1x56xf32>,
    %171 = vector.extract_strided_slice %164 {offsets = [0, 0], sizes = [8, 16], strides = [1, 1]} : vector<8x24xf32> to vector<8x16xf32>
    %cst_57 = arith.constant 0.000000e+00 : f32
    %172 = vector.broadcast %cst_57 : f32 to vector<8x16xf32>
    %173 = arith.maximumf %171, %172 : vector<8x16xf32>
    %c0_58 = arith.constant 0 : index
    %c4 = arith.constant 4 : index
    %c0_59 = arith.constant 0 : index
    %174 = vector.load %arg2[%c0_58, %c4, %c0_59] : memref<8x6x16xf32, #tpu.memory_space<vmem>>, vector<8x1x16xf32>
    %175 = vector.shape_cast %174 : vector<8x1x16xf32> to vector<8x16xf32>
    %176 = arith.addf %175, %173 : vector<8x16xf32>
    %cst_60 = arith.constant 5.000000e-01 : f32
    %177 = vector.broadcast %cst_60 : f32 to vector<8x16xf32>
    %178 = arith.mulf %176, %177 : vector<8x16xf32>
    %179 = tpu.concatenate %178, %162 in 1 : vector<8x16xf32>, vector<8x32xf32> -> vector<8x48xf32>
    %cst_61 = arith.constant dense<0.000000e+00> : vector<8x128xf32>
    %180 = tpu.matmul %179, %0, %cst_61 {dimension_numbers = #tpu.dot_dimension_numbers<[1], [0], [0], [1], [0, 0, 1, 1], [], []>} : vector<8x48xf32>, vector<48x128xf32>, vector<8x128xf32> -> vector<8x128xf32>
    %181 = arith.addf %180, %4 : vector<8x128xf32>
    %182 = vector.extract_strided_slice %181 {offsets = [0, 0], sizes = [8, 32], strides = [1, 1]} : vector<8x128xf32> to vector<8x32xf32>
    %183 = arith.negf %182 : vector<8x32xf32>
    %184 = math.exp %183 : vector<8x32xf32>
    %cst_62 = arith.constant 1.000000e+00 : f32
    %185 = vector.broadcast %cst_62 : f32 to vector<8x32xf32>
    %186 = arith.addf %185, %184 : vector<8x32xf32>
    %187 = arith.divf %185, %186 : vector<8x32xf32>
    %188 = vector.extract_strided_slice %181 {offsets = [0, 32], sizes = [8, 32], strides = [1, 1]} : vector<8x128xf32> to vector<8x32xf32>
    %189 = arith.negf %188 : vector<8x32xf32>
    %190 = math.exp %189 : vector<8x32xf32>
    %cst_63 = arith.constant 1.000000e+00 : f32
    %191 = vector.broadcast %cst_63 : f32 to vector<8x32xf32>
    %192 = arith.addf %191, %190 : vector<8x32xf32>
    %193 = arith.divf %191, %192 : vector<8x32xf32>
    %194 = vector.extract_strided_slice %181 {offsets = [0, 64], sizes = [8, 32], strides = [1, 1]} : vector<8x128xf32> to vector<8x32xf32>
    %195 = vector.extract_strided_slice %181 {offsets = [0, 96], sizes = [8, 32], strides = [1, 1]} : vector<8x128xf32> to vector<8x32xf32>
    %196 = arith.mulf %187, %195 : vector<8x32xf32>
    %197 = arith.addf %194, %196 : vector<8x32xf32>
    %198 = math.tanh %197 : vector<8x32xf32>
    %cst_64 = arith.constant 1.000000e+00 : f32
    %199 = vector.broadcast %cst_64 : f32 to vector<8x32xf32>
    %200 = arith.subf %199, %193 : vector<8x32xf32>
    %201 = arith.mulf %200, %198 : vector<8x32xf32>
    %202 = arith.mulf %193, %162 : vector<8x32xf32>
    %203 = arith.addf %201, %202 : vector<8x32xf32>
    %cst_65 = arith.constant dense<0.000000e+00> : vector<8x24xf32>
    %204 = tpu.matmul %203, %1, %cst_65 {dimension_numbers = #tpu.dot_dimension_numbers<[1], [0], [0], [1], [0, 0, 1, 1], [], []>} : vector<8x32xf32>, vector<32x24xf32>, vector<8x24xf32> -> vector<8x24xf32>
    %205 = arith.addf %204, %7 : vector<8x24xf32>
    %206 = vector.extract_strided_slice %205 {offsets = [0, 16], sizes = [8, 8], strides = [1, 1]} : vector<8x24xf32> to vector<8x8xf32>
    %207 = math.tanh %206 : vector<8x8xf32>
    %208 = tpu.concatenate %178, %203, %207 in 1 : vector<8x16xf32>, vector<8x32xf32>, vector<8x8xf32> -> vector<8x56xf32>
    %c0_66 = arith.constant 0 : index
    %c4_67 = arith.constant 4 : index
    %c0_68 = arith.constant 0 : index
    %209 = vector.load %arg7[%c0_66, %c4_67, %c0_68] : memref<8x6x56xf32, #tpu.memory_space<vmem>>, vector<8x1x56xf32>
    %210 = vector.shape_cast %209 : vector<8x1x56xf32> to vector<8x56xf32>
    %211 = vector.shape_cast %208 : vector<8x56xf32> to vector<8x1x56xf32>
    tpu.vector_store %arg7[%c0_66, %c4_67, %c0_68], %211 {strides = array<i32>} : memref<8x6x56xf32, #tpu.memory_space<vmem>>, vector<8x1x56xf32>,
    %212 = vector.extract_strided_slice %205 {offsets = [0, 0], sizes = [8, 16], strides = [1, 1]} : vector<8x24xf32> to vector<8x16xf32>
    %cst_69 = arith.constant 0.000000e+00 : f32
    %213 = vector.broadcast %cst_69 : f32 to vector<8x16xf32>
    %214 = arith.maximumf %212, %213 : vector<8x16xf32>
    %c0_70 = arith.constant 0 : index
    %c5 = arith.constant 5 : index
    %c0_71 = arith.constant 0 : index
    %215 = vector.load %arg2[%c0_70, %c5, %c0_71] : memref<8x6x16xf32, #tpu.memory_space<vmem>>, vector<8x1x16xf32>
    %216 = vector.shape_cast %215 : vector<8x1x16xf32> to vector<8x16xf32>
    %217 = arith.addf %216, %214 : vector<8x16xf32>
    %cst_72 = arith.constant 5.000000e-01 : f32
    %218 = vector.broadcast %cst_72 : f32 to vector<8x16xf32>
    %219 = arith.mulf %217, %218 : vector<8x16xf32>
    %220 = tpu.concatenate %219, %203 in 1 : vector<8x16xf32>, vector<8x32xf32> -> vector<8x48xf32>
    %cst_73 = arith.constant dense<0.000000e+00> : vector<8x128xf32>
    %221 = tpu.matmul %220, %0, %cst_73 {dimension_numbers = #tpu.dot_dimension_numbers<[1], [0], [0], [1], [0, 0, 1, 1], [], []>} : vector<8x48xf32>, vector<48x128xf32>, vector<8x128xf32> -> vector<8x128xf32>
    %222 = arith.addf %221, %4 : vector<8x128xf32>
    %223 = vector.extract_strided_slice %222 {offsets = [0, 0], sizes = [8, 32], strides = [1, 1]} : vector<8x128xf32> to vector<8x32xf32>
    %224 = arith.negf %223 : vector<8x32xf32>
    %225 = math.exp %224 : vector<8x32xf32>
    %cst_74 = arith.constant 1.000000e+00 : f32
    %226 = vector.broadcast %cst_74 : f32 to vector<8x32xf32>
    %227 = arith.addf %226, %225 : vector<8x32xf32>
    %228 = arith.divf %226, %227 : vector<8x32xf32>
    %229 = vector.extract_strided_slice %222 {offsets = [0, 32], sizes = [8, 32], strides = [1, 1]} : vector<8x128xf32> to vector<8x32xf32>
    %230 = arith.negf %229 : vector<8x32xf32>
    %231 = math.exp %230 : vector<8x32xf32>
    %cst_75 = arith.constant 1.000000e+00 : f32
    %232 = vector.broadcast %cst_75 : f32 to vector<8x32xf32>
    %233 = arith.addf %232, %231 : vector<8x32xf32>
    %234 = arith.divf %232, %233 : vector<8x32xf32>
    %235 = vector.extract_strided_slice %222 {offsets = [0, 64], sizes = [8, 32], strides = [1, 1]} : vector<8x128xf32> to vector<8x32xf32>
    %236 = vector.extract_strided_slice %222 {offsets = [0, 96], sizes = [8, 32], strides = [1, 1]} : vector<8x128xf32> to vector<8x32xf32>
    %237 = arith.mulf %228, %236 : vector<8x32xf32>
    %238 = arith.addf %235, %237 : vector<8x32xf32>
    %239 = math.tanh %238 : vector<8x32xf32>
    %cst_76 = arith.constant 1.000000e+00 : f32
    %240 = vector.broadcast %cst_76 : f32 to vector<8x32xf32>
    %241 = arith.subf %240, %234 : vector<8x32xf32>
    %242 = arith.mulf %241, %239 : vector<8x32xf32>
    %243 = arith.mulf %234, %203 : vector<8x32xf32>
    %244 = arith.addf %242, %243 : vector<8x32xf32>
    %cst_77 = arith.constant dense<0.000000e+00> : vector<8x24xf32>
    %245 = tpu.matmul %244, %1, %cst_77 {dimension_numbers = #tpu.dot_dimension_numbers<[1], [0], [0], [1], [0, 0, 1, 1], [], []>} : vector<8x32xf32>, vector<32x24xf32>, vector<8x24xf32> -> vector<8x24xf32>
    %246 = arith.addf %245, %7 : vector<8x24xf32>
    %247 = vector.extract_strided_slice %246 {offsets = [0, 16], sizes = [8, 8], strides = [1, 1]} : vector<8x24xf32> to vector<8x8xf32>
    %248 = math.tanh %247 : vector<8x8xf32>
    %249 = tpu.concatenate %219, %244, %248 in 1 : vector<8x16xf32>, vector<8x32xf32>, vector<8x8xf32> -> vector<8x56xf32>
    %c0_78 = arith.constant 0 : index
    %c5_79 = arith.constant 5 : index
    %c0_80 = arith.constant 0 : index
    %250 = vector.load %arg7[%c0_78, %c5_79, %c0_80] : memref<8x6x56xf32, #tpu.memory_space<vmem>>, vector<8x1x56xf32>
    %251 = vector.shape_cast %250 : vector<8x1x56xf32> to vector<8x56xf32>
    %252 = vector.shape_cast %249 : vector<8x56xf32> to vector<8x1x56xf32>
    tpu.vector_store %arg7[%c0_78, %c5_79, %c0_80], %252 {strides = array<i32>} : memref<8x6x56xf32, #tpu.memory_space<vmem>>, vector<8x1x56xf32>,
    return
  }
  func.func @transform_0(%arg0: i32) -> (i32, i32) {
    %c0_i32 = arith.constant 0 : i32
    %c0_i32_0 = arith.constant 0 : i32
    return %arg0, %c0_i32 : i32, i32
  }
  func.func @transform_1(%arg0: i32) -> (i32, i32, i32) {
    %c0_i32 = arith.constant 0 : i32
    %c0_i32_0 = arith.constant 0 : i32
    %c0_i32_1 = arith.constant 0 : i32
    return %arg0, %c0_i32, %c0_i32_0 : i32, i32, i32
  }
  func.func @transform_2(%arg0: i32) -> (i32, i32) {
    %c0_i32 = arith.constant 0 : i32
    %c0_i32_0 = arith.constant 0 : i32
    %c0_i32_1 = arith.constant 0 : i32
    return %c0_i32, %c0_i32_0 : i32, i32
  }
  func.func @transform_3(%arg0: i32) -> (i32, i32) {
    %c0_i32 = arith.constant 0 : i32
    %c0_i32_0 = arith.constant 0 : i32
    %c0_i32_1 = arith.constant 0 : i32
    return %c0_i32, %c0_i32_0 : i32, i32
  }
  func.func @transform_4(%arg0: i32) -> (i32, i32) {
    %c0_i32 = arith.constant 0 : i32
    %c0_i32_0 = arith.constant 0 : i32
    %c0_i32_1 = arith.constant 0 : i32
    return %c0_i32, %c0_i32_0 : i32, i32
  }
  func.func @transform_5(%arg0: i32) -> (i32, i32) {
    %c0_i32 = arith.constant 0 : i32
    %c0_i32_0 = arith.constant 0 : i32
    %c0_i32_1 = arith.constant 0 : i32
    return %c0_i32, %c0_i32_0 : i32, i32
  }
  func.func @transform_6(%arg0: i32) -> (i32, i32, i32) {
    %c0_i32 = arith.constant 0 : i32
    %c0_i32_0 = arith.constant 0 : i32
    %c0_i32_1 = arith.constant 0 : i32
    return %arg0, %c0_i32, %c0_i32_0 : i32, i32, i32
  }
}

</mosaic_0001>

<bundles_post_ra>
// kernel: tpu_custom_call.1
= control target key start
LH: loop header
LB: loop body
LE: loop exit
PB: predicated region body
PF: predicated region fallthrough
CT: control target
= control target key end

     0   :  { %v2333_v1 = vmov 0.0|0.0   ;;  %s2334_s27 = smov 16   ;;  %vm2335_vm0 = vmmov 0   ;;  %v2336_v8 = vmov 0.0   ;;  %vm81_vm1 = vcmask 1041409   ;;  %s2339_s12 = smov 96   ;;  %s3104_s0 = inlined_call_operand.vmem [shape: f32[8,32], index: 0, kind: input, shape index: {}]   ;;  %s3105_s2 = inlined_call_operand.vmem [shape: f32[48,128], index: 2, kind: input, shape index: {}]   ;;  %s3106_s1 = inlined_call_operand.vmem [shape: f32[8,6,16], index: 1, kind: input, shape index: {}]   ;;  %s3107_s3 = inlined_call_operand.vmem [shape: f32[1,128], index: 3, kind: input, shape index: {}]   ;;  %s3108_s4 = inlined_call_operand.vmem [shape: f32[32,24], index: 4, kind: input, shape index: {}]   ;;  %s3109_s5 = inlined_call_operand.vmem [shape: f32[1,24], index: 5, kind: input, shape index: {}]   ;;  %s3110_s6 = inlined_call_operand.vmem [shape: f32[8,6,56], index: 6, kind: output, shape index: {}]  }
   0x1   :  { %v2380_v0 = vld [vmem:[%s3104_s0] sm:$0xff]  ;;  %2185 = vmatprep.subr.bf16.mxu0 %v2333_v1  ;;  %v24_v3 = vld [vmem:[%s3105_s2 + $0x8] sm:$0xff]  ;;  %2194 = vmatprep.subr.bf16.mxu1 %v2333_v1  ;;  %v25_v5 = vld [vmem:[%s3105_s2 + $0x10] sm:$0xff]  ;;  %vm84_vm2 = vcmask 1042434   ;;  %vm87_vm3 = vcmask 1043459   ;;  %vm90_vm4 = vcmask 1044484  }
   0x2   :  { %v23_v2 = vld [vmem:[%s3105_s2] sm:$0xff]  ;;  %103 = vrot.lane.b32.xlu0 %v2380_v0, %s2334_s27  ;;  %v26_v6 = vld [vmem:[%s3105_s2 + $0x18] sm:$0xff]  ;;  %2041 = vmatprep.mubr.msk.f32.mxu0 %vm2335_vm0, %v2336_v8  ;;  %v28_v10 = vld [vmem:[%s3105_s2 + $0x28] sm:$0xff]  ;;  %vm93_vm5 = vcmask 1045509   ;;  %vm96_vm6 = vcmask 1046534   ;;  %vm99_vm7 = vcmask 1047559  }
   0x3   :  { %v2391_v4 = vpack.c.bf16 %v24_v3, %v23_v2  ;;  %v2400_v7 = vpack.c.bf16 %v26_v6, %v25_v5  ;;  %v27_v9 = vld [vmem:[%s3105_s2 + $0x20] sm:$0xff]  ;;  %2052 = vmatprep.mubr.msk.f32.mxu1 %vm2335_vm0, %v2336_v8  ;;  %v49_v12 = vld [vmem:[%s3106_s1 + $0x8] sm:$0x1]  ;;  %v50_v13 = vld [vmem:[%s3106_s1 + $0x10] sm:$0x1]  ;;  %vm106_vm8 = vcmask 130048  }
   0x4   :  { %v2414_v11 = vpack.c.bf16 %v28_v10, %v27_v9  ;;  %v65_v14 = vmul.f32 0.5, %v49_v12  ;;  %v48_v15 = vld [vmem:[%s3106_s1] sm:$0x1]  ;;  %v51_v16 = vld [vmem:[%s3106_s1 + $0x18] sm:$0x1]  ;;  %v66_v17 = vmul.f32 0.5, %v50_v13 }
   0x5   :  { %2187 = vmatpush3.bf16.msra.mxu0 %v2391_v4  ;;  %v64_v18 = vmul.f32 0.5, %v48_v15  ;;  %v52_v20 = vld [vmem:[%s3106_s1 + $0x20] sm:$0x1]  ;;  %v67_v21 = vmul.f32 0.5, %v51_v16  ;;  %v53_v24 = vld [vmem:[%s3106_s1 + $0x28] sm:$0x1] }
   0x6   :  { %2188 = vmatprep.subr.bf16.mxu0 %v2333_v1  ;;  %v80_v19 = vrot.slane %v65_v14, 7  ;;  %v83_v22 = vrot.slane %v66_v17, 6  ;;  %v68_v25 = vmul.f32 0.5, %v52_v20  ;;  %v54_v28 = vld [vmem:[%s3106_s1 + $0x30] sm:$0x1]  ;;  %v69_v29 = vmul.f32 0.5, %v53_v24 }
   0x7   :  { %v86_v26 = vrot.slane %v67_v21, 5  ;;  %v55_v32 = vld [vmem:[%s3106_s1 + $0x38] sm:$0x1]  ;;  %v70_v33 = vmul.f32 0.5, %v54_v28  ;;  %vm108_vm9 = vcmask 392192   ;;  %s2337_s0 = smov 32  }
   0x8   :  { %v82_v23 = vsel %vm81_vm1, %v80_v19, %v64_v18  ;;  %v89_v30 = vrot.slane %v68_v25, 4  ;;  %v92_v34 = vrot.slane %v69_v29, 3  ;;  %v71_v36 = vmul.f32 0.5, %v55_v32  ;;  %v2460_v44 = vld [vmem:[%s3107_s3] ss:$0 sm:$0xff]  ;;  %s2338_s3 = smov 64  }
   0x9   :  { %2190 = vmatpush3.bf16.msra.mxu0 %v2400_v7  ;;  %v85_v27 = vsel %vm84_vm2, %v83_v22, %v82_v23  ;;  %v95_v37 = vrot.slane %v70_v33, 2  ;;  %v29_v56 = vld [vmem:[%s3108_s4] sm:$0xff]  ;;  %v30_v57 = vld [vmem:[%s3108_s4 + $0x8] sm:$0xff]  ;;  %v31_v58 = vld [vmem:[%s3108_s4 + $0x10] sm:$0xff]  ;;  %vm213_vm10 = vcmask 261120   ;;  %vm354_vm11 = vcmask 450560  }
   0xa   :  { %2191 = vmatprep.subr.bf16.mxu0 %v2333_v1  ;;  %v88_v31 = vsel %vm87_vm3, %v86_v26, %v85_v27  ;;  %v98_v39 = vrot.slane %v71_v36, 1  ;;  %v2476_v59 = vpack.c.bf16 %v30_v57, %v29_v56  ;;  %v32_v60 = vld [vmem:[%s3108_s4 + $0x18] sm:$0xff]  ;;  %s2340_s4 = smov 112   ;;  %v2510_v10 = vld [vmem:[%s3109_s5] ss:$0 sm:$0xff] }
   0xb   :  { %v91_v35 = vsel %vm90_vm4, %v89_v30, %v88_v31  ;;  %v2482_v61 = vpack.c.bf16 %v32_v60, %v31_v58  ;;  %v364_v15 = vld [vmem:[%s3106_s1 + $0x1] sm:$0x1]  ;;  %v365_v17 = vld [vmem:[%s3106_s1 + $0x9] sm:$0x1]  ;;  %v366_v18 = vld [vmem:[%s3106_s1 + $0x11] sm:$0x1] }
   0xc   :  { %v94_v38 = vsel %vm93_vm5, %v92_v34, %v91_v35  ;;  %2196 = vmatpush3.bf16.msra.mxu1 %v2476_v59  ;;  %v367_v19 = vld [vmem:[%s3106_s1 + $0x19] sm:$0x1]  ;;  %v368_v20 = vld [vmem:[%s3106_s1 + $0x21] sm:$0x1]  ;;  %v369_v21 = vld [vmem:[%s3106_s1 + $0x29] sm:$0x1] }
   0xd   :  { %2193 = vmatpush3.bf16.msra.mxu0 %v2414_v11  ;;  %v97_v40 = vsel %vm96_vm6, %v95_v37, %v94_v38  ;;  %2197 = vmatprep.subr.bf16.mxu1 %v2333_v1  ;;  %v370_v22 = vld [vmem:[%s3106_s1 + $0x31] sm:$0x1]  ;;  %v371_v27 = vld [vmem:[%s3106_s1 + $0x39] sm:$0x1] }
   0xe   :  { %2209 = vmatprep.subr.bf16.mxu0 %v2333_v1  ;;  %v2450_v41 = vsel %vm99_vm7, %v98_v39, %v97_v40 }
  0x10   :  { %2199 = vmatpush3.bf16.msra.mxu1 %v2482_v61 }
  0x11   :  { %2200 = vmatprep.subr.bf16.mxu1 %v2333_v1 }
  0x74   :  { %v104_v42 = vpop.permute.xlu0 %103 }
  0x75   :  { %v107_v43 = vsel %vm106_vm8, %v2450_v41, %v104_v42 }
  0x76   :  { %2042 = vmatmul.mubr.msk.f32.vlgmr.msra.gmra.mrb[0].mxu0 %vm108_vm9, %v107_v43 }
  0x77   :  { %2078 = vmatprep.mubr.msk.f32.mxu0 %vm2335_vm0, %v2336_v8  ;;  %2211 = vmatpush3.bf16.msra.mxu0 %v2476_v59 }
  0x78   :  { %2212 = vmatprep.subr.bf16.mxu0 %v2333_v1 }
  0x7b   :  { %2214 = vmatpush3.bf16.msra.mxu0 %v2482_v61 }
  0x7c   :  { %2215 = vmatprep.subr.bf16.mxu0 %v2333_v1 }
 0x149   :  { %v178_v45 = vpop.f32.mrb[0].mxu0 }
 0x14a   :  { %v179_v46 = vadd.f32 %v2460_v44, %v178_v45  ;;  %v2043_v47 = vpop.f32.mrb[1].mxu0 }
 0x14c   :  { %189 = vrot.lane.b32.xlu0 %v179_v46, %s2337_s0  ;;  %v1940_v48 = vmul.f32 -1.442695, %v179_v46 }
 0x14e   :  { %2284 = vpow2.f32 %v1940_v48 }
 0x150   :  { %205 = vrot.lane.b32.xlu0 %v2380_v0, %s2337_s0 }
 0x158   :  { %v2285_v49 = vpop.eup %2284 }
 0x159   :  { %v185_v50 = vadd.f32 1.0, %v2285_v49 }
 0x15b   :  { %2286 = vrcp.f32 %v185_v50 }
 0x165   :  { %v2287_v51 = vpop.eup %2286 }
 0x166   :  { %v199_v0 = vsub.f32 1.0, %v2287_v51 }
 0x1be   :  { %v190_v52 = vpop.permute.xlu0 %189 }
 0x1bf   :  { %v192_v53 = vmul.f32 %v2287_v51, %v190_v52 }
 0x1c1   :  { %194 = vrot.lane.b32.xlu1 %v192_v53, %s2338_s3 }
 0x1c2   :  { %v206_v63 = vpop.permute.xlu0 %205 }
 0x1c3   :  { %v208_v3 = vmul.f32 %v2287_v51, %v206_v63 }
 0x233   :  { %v195_v54 = vpop.permute.xlu1 %194 }
 0x234   :  { %v197_v55 = vadd.f32 %v195_v54, %v179_v46 }
 0x236   :  { %2288 = vtanh.f32 %v197_v55 }
 0x240   :  { %v2289_v62 = vpop.eup %2288 }
 0x241   :  { %201 = vrot.lane.b32.xlu1 %v2289_v62, %s2339_s12 }
 0x2b3   :  { %v202_v2 = vpop.permute.xlu1 %201 }
 0x2b4   :  { %v204_v5 = vmul.f32 %v202_v2, %v199_v0 }
 0x2b6   :  { %v2492_v6 = vadd.f32 %v208_v3, %v204_v5 }
 0x2b8   :  { %287 = vrot.lane.b32.xlu0 %v2492_v6, %s2340_s4  ;;  %211 = vrot.lane.b32.xlu1 %v2492_v6, %s2339_s12 }
 0x32a   :  { %v212_v9 = vpop.permute.xlu1 %211  ;;  %v2546_v0 = vpop.permute.xlu0 %287 }
 0x32b   :  { %2053 = vmatmul.mubr.msk.f32.vlgmr.msra.gmra.mrb[0].mxu1 %vm213_vm10, %v212_v9 }
 0x32c   :  { %2202 = vmatpush3.bf16.msra.mxu1 %v2391_v4  ;;  %2067 = vmatprep.mubr.msk.f32.mxu1 %vm2335_vm0, %v2336_v8 }
 0x32d   :  { %2203 = vmatprep.subr.bf16.mxu1 %v2333_v1 }
 0x330   :  { %2205 = vmatpush3.bf16.msra.mxu1 %v2400_v7 }
 0x331   :  { %2206 = vmatprep.subr.bf16.mxu1 %v2333_v1 }
 0x334   :  { %2208 = vmatpush3.bf16.msra.mxu1 %v2414_v11 }
 0x335   :  { %2224 = vmatprep.subr.bf16.mxu1 %v2333_v1 }
 0x3fe   :  { %v282_v12 = vpop.f32.mrb[0].mxu1 }
 0x3ff   :  { %v2513_v13 = vadd.f32 %v2510_v10, %v282_v12  ;;  %v2054_v14 = vpop.f32.mrb[1].mxu1 }
 0x401   :  { %v363_v16 = vmax.f32 %v2513_v13, 0.0 }
 0x403   :  { %v373_v23 = vrot.slane %v363_v16, 1  ;;  %v374_v24 = vrot.slane %v363_v16, 2  ;;  %v375_v25 = vrot.slane %v363_v16, 3  ;;  %v376_v26 = vrot.slane %v363_v16, 4 }
 0x404   :  { %v377_v28 = vrot.slane %v363_v16, 5  ;;  %v378_v29 = vrot.slane %v363_v16, 6  ;;  %v379_v30 = vrot.slane %v363_v16, 7  ;;  %v388_v31 = vadd.f32 %v364_v15, %v363_v16 }
 0x405   :  { %v389_v32 = vadd.f32 %v373_v23, %v365_v17  ;;  %v390_v33 = vadd.f32 %v374_v24, %v366_v18  ;;  %v391_v34 = vadd.f32 %v375_v25, %v367_v19  ;;  %v392_v35 = vadd.f32 %v376_v26, %v368_v20 }
 0x406   :  { %v393_v36 = vadd.f32 %v377_v28, %v369_v21  ;;  %v394_v37 = vadd.f32 %v378_v29, %v370_v22  ;;  %v395_v38 = vadd.f32 %v379_v30, %v371_v27  ;;  %v396_v45 = vmul.f32 0.5, %v388_v31  ;;  %v678_v31 = vld [vmem:[%s3106_s1 + $0x2] sm:$0x1] }
 0x407   :  { %v397_v39 = vmul.f32 0.5, %v389_v32  ;;  %v398_v40 = vmul.f32 0.5, %v390_v33  ;;  %v399_v42 = vmul.f32 0.5, %v391_v34  ;;  %v400_v43 = vmul.f32 0.5, %v392_v35  ;;  %v679_v33 = vld [vmem:[%s3106_s1 + $0xa] sm:$0x1] }
 0x408   :  { %v401_v46 = vmul.f32 0.5, %v393_v36  ;;  %v402_v49 = vmul.f32 0.5, %v394_v37  ;;  %v403_v50 = vmul.f32 0.5, %v395_v38  ;;  %v680_v34 = vld [vmem:[%s3106_s1 + $0x12] sm:$0x1] }
 0x409   :  { %v412_v47 = vrot.slane %v397_v39, 7  ;;  %v414_v48 = vrot.slane %v398_v40, 6  ;;  %v416_v52 = vrot.slane %v399_v42, 5  ;;  %v418_v54 = vrot.slane %v400_v43, 4  ;;  %v681_v35 = vld [vmem:[%s3106_s1 + $0x1a] sm:$0x1] }
 0x40a   :  { %v420_v56 = vrot.slane %v401_v46, 3  ;;  %v422_v58 = vrot.slane %v402_v49, 2  ;;  %v424_v62 = vrot.slane %v403_v50, 1  ;;  %v682_v36 = vld [vmem:[%s3106_s1 + $0x22] sm:$0x1] }
 0x40b   :  { %v413_v51 = vsel %vm81_vm1, %v412_v47, %v396_v45  ;;  %v683_v37 = vld [vmem:[%s3106_s1 + $0x2a] sm:$0x1]  ;;  %v684_v38 = vld [vmem:[%s3106_s1 + $0x32] sm:$0x1]  ;;  %v685_v45 = vld [vmem:[%s3106_s1 + $0x3a] sm:$0x1] }
 0x40c   :  { %v415_v53 = vsel %vm84_vm2, %v414_v48, %v413_v51 }
 0x40d   :  { %v417_v55 = vsel %vm87_vm3, %v416_v52, %v415_v53 }
 0x40e   :  { %v419_v57 = vsel %vm90_vm4, %v418_v54, %v417_v55 }
 0x40f   :  { %v421_v60 = vsel %vm93_vm5, %v420_v56, %v419_v57 }
 0x410   :  { %v423_v63 = vsel %vm96_vm6, %v422_v58, %v421_v60 }
 0x411   :  { %v2549_v2 = vsel %vm99_vm7, %v424_v62, %v423_v63 }
 0x412   :  { %v427_v3 = vsel %vm106_vm8, %v2549_v2, %v2546_v0 }
 0x413   :  { %2068 = vmatmul.mubr.msk.f32.vlgmr.msra.gmra.mrb[2].mxu1 %vm108_vm9, %v427_v3 }
 0x414   :  { %2226 = vmatpush3.bf16.msra.mxu1 %v2476_v59  ;;  %2104 = vmatprep.mubr.msk.f32.mxu1 %vm2335_vm0, %v2336_v8 }
 0x415   :  { %2227 = vmatprep.subr.bf16.mxu1 %v2333_v1 }
 0x418   :  { %2229 = vmatpush3.bf16.msra.mxu1 %v2482_v61 }
 0x419   :  { %2230 = vmatprep.subr.bf16.mxu1 %v2333_v1 }
 0x4e6   :  { %v497_v5 = vpop.f32.mrb[2].mxu1 }
 0x4e7   :  { %v498_v9 = vadd.f32 %v2460_v44, %v497_v5  ;;  %v2069_v12 = vpop.f32.mrb[3].mxu1 }
 0x4e9   :  { %508 = vrot.lane.b32.xlu1 %v498_v9, %s2337_s0  ;;  %v1943_v14 = vmul.f32 -1.442695, %v498_v9 }
 0x4eb   :  { %2290 = vpow2.f32 %v1943_v14 }
 0x4f5   :  { %v2291_v15 = vpop.eup %2290 }
 0x4f6   :  { %v504_v16 = vadd.f32 1.0, %v2291_v15 }
 0x4f8   :  { %2292 = vrcp.f32 %v504_v16 }
 0x502   :  { %v2293_v17 = vpop.eup %2292 }
 0x503   :  { %v518_v23 = vsub.f32 1.0, %v2293_v17  ;;  %v524_v25 = vmul.f32 %v2293_v17, %v2492_v6 }
 0x55b   :  { %v509_v18 = vpop.permute.xlu1 %508 }
 0x55c   :  { %v511_v19 = vmul.f32 %v2293_v17, %v509_v18 }
 0x55e   :  { %513 = vrot.lane.b32.xlu0 %v511_v19, %s2338_s3 }
 0x5d0   :  { %v514_v20 = vpop.permute.xlu0 %513 }
 0x5d1   :  { %v516_v21 = vadd.f32 %v514_v20, %v498_v9 }
 0x5d3   :  { %2294 = vtanh.f32 %v516_v21 }
 0x5dd   :  { %v2295_v22 = vpop.eup %2294 }
 0x5de   :  { %520 = vrot.lane.b32.xlu1 %v2295_v22, %s2339_s12 }
 0x650   :  { %v521_v24 = vpop.permute.xlu1 %520 }
 0x651   :  { %v523_v26 = vmul.f32 %v521_v24, %v518_v23 }
 0x653   :  { %v2566_v27 = vadd.f32 %v524_v25, %v523_v26 }
 0x655   :  { %602 = vrot.lane.b32.xlu1 %v2566_v27, %s2340_s4  ;;  %527 = vrot.lane.b32.xlu0 %v2566_v27, %s2339_s12 }
 0x6c7   :  { %v528_v28 = vpop.permute.xlu0 %527  ;;  %v2615_v26 = vpop.permute.xlu1 %602 }
 0x6c8   :  { %2079 = vmatmul.mubr.msk.f32.vlgmr.msra.gmra.mrb[2].mxu0 %vm213_vm10, %v528_v28 }
 0x6c9   :  { %2217 = vmatpush3.bf16.msra.mxu0 %v2391_v4  ;;  %2093 = vmatprep.mubr.msk.f32.mxu0 %vm2335_vm0, %v2336_v8 }
 0x6ca   :  { %2218 = vmatprep.subr.bf16.mxu0 %v2333_v1 }
 0x6cd   :  { %2220 = vmatpush3.bf16.msra.mxu0 %v2400_v7 }
 0x6ce   :  { %2221 = vmatprep.subr.bf16.mxu0 %v2333_v1 }
 0x6d1   :  { %2223 = vmatpush3.bf16.msra.mxu0 %v2414_v11 }
 0x6d2   :  { %2239 = vmatprep.subr.bf16.mxu0 %v2333_v1 }
 0x79b   :  { %v597_v6 = vpop.f32.mrb[2].mxu0 }
 0x79c   :  { %v2582_v29 = vadd.f32 %v2510_v10, %v597_v6  ;;  %v2080_v30 = vpop.f32.mrb[3].mxu0 }
 0x79e   :  { %v677_v32 = vmax.f32 %v2582_v29, 0.0 }
 0x7a0   :  { %v687_v39 = vrot.slane %v677_v32, 1  ;;  %v688_v40 = vrot.slane %v677_v32, 2  ;;  %v689_v42 = vrot.slane %v677_v32, 3  ;;  %v690_v43 = vrot.slane %v677_v32, 4 }
 0x7a1   :  { %v691_v46 = vrot.slane %v677_v32, 5  ;;  %v692_v47 = vrot.slane %v677_v32, 6  ;;  %v693_v48 = vrot.slane %v677_v32, 7  ;;  %v702_v49 = vadd.f32 %v678_v31, %v677_v32 }
 0x7a2   :  { %v703_v50 = vadd.f32 %v687_v39, %v679_v33  ;;  %v704_v51 = vadd.f32 %v688_v40, %v680_v34  ;;  %v705_v52 = vadd.f32 %v689_v42, %v681_v35  ;;  %v706_v53 = vadd.f32 %v690_v43, %v682_v36 }
 0x7a3   :  { %v707_v54 = vadd.f32 %v691_v46, %v683_v37  ;;  %v708_v55 = vadd.f32 %v692_v47, %v684_v38  ;;  %v709_v56 = vadd.f32 %v693_v48, %v685_v45  ;;  %v710_v63 = vmul.f32 0.5, %v702_v49 }
 0x7a4   :  { %v711_v57 = vmul.f32 0.5, %v703_v50  ;;  %v712_v58 = vmul.f32 0.5, %v704_v51  ;;  %v713_v60 = vmul.f32 0.5, %v705_v52  ;;  %v714_v62 = vmul.f32 0.5, %v706_v53  ;;  %v992_v52 = vld [vmem:[%s3106_s1 + $0x3] sm:$0x1] }
 0x7a5   :  { %v715_v3 = vmul.f32 0.5, %v707_v54  ;;  %v716_v12 = vmul.f32 0.5, %v708_v55  ;;  %v717_v14 = vmul.f32 0.5, %v709_v56  ;;  %v993_v54 = vld [vmem:[%s3106_s1 + $0xb] sm:$0x1] }
 0x7a6   :  { %v726_v5 = vrot.slane %v711_v57, 7  ;;  %v728_v9 = vrot.slane %v712_v58, 6  ;;  %v730_v16 = vrot.slane %v713_v60, 5  ;;  %v732_v18 = vrot.slane %v714_v62, 4  ;;  %v994_v55 = vld [vmem:[%s3106_s1 + $0x13] sm:$0x1] }
 0x7a7   :  { %v734_v20 = vrot.slane %v715_v3, 3  ;;  %v736_v22 = vrot.slane %v716_v12, 2  ;;  %v738_v24 = vrot.slane %v717_v14, 1  ;;  %v995_v56 = vld [vmem:[%s3106_s1 + $0x1b] sm:$0x1] }
 0x7a8   :  { %v727_v15 = vsel %vm81_vm1, %v726_v5, %v710_v63  ;;  %v996_v57 = vld [vmem:[%s3106_s1 + $0x23] sm:$0x1]  ;;  %v997_v58 = vld [vmem:[%s3106_s1 + $0x2b] sm:$0x1]  ;;  %v998_v60 = vld [vmem:[%s3106_s1 + $0x33] sm:$0x1] }
 0x7a9   :  { %v729_v17 = vsel %vm84_vm2, %v728_v9, %v727_v15  ;;  %v999_v9 = vld [vmem:[%s3106_s1 + $0x3b] sm:$0x1] }
 0x7aa   :  { %v731_v19 = vsel %vm87_vm3, %v730_v16, %v729_v17 }
 0x7ab   :  { %v733_v21 = vsel %vm90_vm4, %v732_v18, %v731_v19 }
 0x7ac   :  { %v735_v23 = vsel %vm93_vm5, %v734_v20, %v733_v21 }
 0x7ad   :  { %v737_v25 = vsel %vm96_vm6, %v736_v22, %v735_v23 }
 0x7ae   :  { %v2618_v28 = vsel %vm99_vm7, %v738_v24, %v737_v25 }
 0x7af   :  { %v741_v6 = vsel %vm106_vm8, %v2618_v28, %v2615_v26 }
 0x7b0   :  { %2094 = vmatmul.mubr.msk.f32.vlgmr.msra.gmra.mrb[4].mxu0 %vm108_vm9, %v741_v6 }
 0x7b1   :  { %2241 = vmatpush3.bf16.msra.mxu0 %v2476_v59  ;;  %2130 = vmatprep.mubr.msk.f32.mxu0 %vm2335_vm0, %v2336_v8 }
 0x7b2   :  { %2242 = vmatprep.subr.bf16.mxu0 %v2333_v1 }
 0x7b5   :  { %2244 = vmatpush3.bf16.msra.mxu0 %v2482_v61 }
 0x7b6   :  { %2245 = vmatprep.subr.bf16.mxu0 %v2333_v1 }
 0x883   :  { %v811_v30 = vpop.f32.mrb[4].mxu0 }
 0x884   :  { %v812_v31 = vadd.f32 %v2460_v44, %v811_v30  ;;  %v2095_v32 = vpop.f32.mrb[5].mxu0 }
 0x886   :  { %822 = vrot.lane.b32.xlu0 %v812_v31, %s2337_s0  ;;  %v1946_v33 = vmul.f32 -1.442695, %v812_v31 }
 0x888   :  { %2296 = vpow2.f32 %v1946_v33 }
 0x892   :  { %v2297_v34 = vpop.eup %2296 }
 0x893   :  { %v818_v35 = vadd.f32 1.0, %v2297_v34 }
 0x895   :  { %2298 = vrcp.f32 %v818_v35 }
 0x89f   :  { %v2299_v36 = vpop.eup %2298 }
 0x8a0   :  { %v832_v43 = vsub.f32 1.0, %v2299_v36  ;;  %v838_v46 = vmul.f32 %v2299_v36, %v2566_v27 }
 0x8f8   :  { %v823_v37 = vpop.permute.xlu0 %822 }
 0x8f9   :  { %v825_v38 = vmul.f32 %v2299_v36, %v823_v37 }
 0x8fb   :  { %827 = vrot.lane.b32.xlu1 %v825_v38, %s2338_s3 }
 0x96d   :  { %v828_v39 = vpop.permute.xlu1 %827 }
 0x96e   :  { %v830_v40 = vadd.f32 %v828_v39, %v812_v31 }
 0x970   :  { %2300 = vtanh.f32 %v830_v40 }
 0x97a   :  { %v2301_v42 = vpop.eup %2300 }
 0x97b   :  { %834 = vrot.lane.b32.xlu0 %v2301_v42, %s2339_s12 }
 0x9ed   :  { %v835_v45 = vpop.permute.xlu0 %834 }
 0x9ee   :  { %v837_v47 = vmul.f32 %v835_v45, %v832_v43 }
 0x9f0   :  { %v2635_v48 = vadd.f32 %v838_v46, %v837_v47 }
 0x9f2   :  { %916 = vrot.lane.b32.xlu0 %v2635_v48, %s2340_s4  ;;  %841 = vrot.lane.b32.xlu1 %v2635_v48, %s2339_s12 }
 0xa64   :  { %v842_v49 = vpop.permute.xlu1 %841 }
 0xa65   :  { %2105 = vmatmul.mubr.msk.f32.vlgmr.msra.gmra.mrb[4].mxu1 %vm213_vm10, %v842_v49 }
 0xa66   :  { %2232 = vmatpush3.bf16.msra.mxu1 %v2391_v4  ;;  %2119 = vmatprep.mubr.msk.f32.mxu1 %vm2335_vm0, %v2336_v8 }
 0xa67   :  { %2233 = vmatprep.subr.bf16.mxu1 %v2333_v1 }
 0xa6a   :  { %2235 = vmatpush3.bf16.msra.mxu1 %v2400_v7 }
 0xa6b   :  { %2236 = vmatprep.subr.bf16.mxu1 %v2333_v1 }
 0xa6e   :  { %2238 = vmatpush3.bf16.msra.mxu1 %v2414_v11 }
 0xa6f   :  { %2254 = vmatprep.subr.bf16.mxu1 %v2333_v1 }
 0xb38   :  { %v911_v27 = vpop.f32.mrb[4].mxu1 }
 0xb39   :  { %v2651_v50 = vadd.f32 %v2510_v10, %v911_v27  ;;  %v2106_v51 = vpop.f32.mrb[5].mxu1 }
 0xb3a   :  { %v2684_v51 = vpop.permute.xlu0 %916 }
 0xb3b   :  { %v991_v53 = vmax.f32 %v2651_v50, 0.0 }
 0xb3d   :  { %v1001_v62 = vrot.slane %v991_v53, 1  ;;  %v1002_v63 = vrot.slane %v991_v53, 2  ;;  %v1003_v3 = vrot.slane %v991_v53, 3  ;;  %v1004_v5 = vrot.slane %v991_v53, 4 }
 0xb3e   :  { %v1005_v12 = vrot.slane %v991_v53, 5  ;;  %v1006_v14 = vrot.slane %v991_v53, 6  ;;  %v1007_v15 = vrot.slane %v991_v53, 7  ;;  %v1016_v16 = vadd.f32 %v992_v52, %v991_v53 }
 0xb3f   :  { %v1017_v17 = vadd.f32 %v1001_v62, %v993_v54  ;;  %v1018_v18 = vadd.f32 %v1002_v63, %v994_v55  ;;  %v1019_v19 = vadd.f32 %v1003_v3, %v995_v56  ;;  %v1020_v20 = vadd.f32 %v1004_v5, %v996_v57 }
 0xb40   :  { %v1021_v21 = vadd.f32 %v1005_v12, %v997_v58  ;;  %v1022_v22 = vadd.f32 %v1006_v14, %v998_v60  ;;  %v1023_v23 = vadd.f32 %v1007_v15, %v999_v9  ;;  %v1024_v31 = vmul.f32 0.5, %v1016_v16 }
 0xb41   :  { %v1025_v24 = vmul.f32 0.5, %v1017_v17  ;;  %v1026_v25 = vmul.f32 0.5, %v1018_v18  ;;  %v1027_v6 = vmul.f32 0.5, %v1019_v19  ;;  %v1028_v30 = vmul.f32 0.5, %v1020_v20 }
 0xb42   :  { %v1029_v32 = vmul.f32 0.5, %v1021_v21  ;;  %v1030_v35 = vmul.f32 0.5, %v1022_v22  ;;  %v1031_v36 = vmul.f32 0.5, %v1023_v23  ;;  %v1306_v22 = vld [vmem:[%s3106_s1 + $0x4] sm:$0x1] }
 0xb43   :  { %v1040_v33 = vrot.slane %v1025_v24, 7  ;;  %v1042_v34 = vrot.slane %v1026_v25, 6  ;;  %v1044_v38 = vrot.slane %v1027_v6, 5  ;;  %v1046_v40 = vrot.slane %v1028_v30, 4  ;;  %v1307_v24 = vld [vmem:[%s3106_s1 + $0xc] sm:$0x1] }
 0xb44   :  { %v1048_v43 = vrot.slane %v1029_v32, 3  ;;  %v1050_v46 = vrot.slane %v1030_v35, 2  ;;  %v1052_v49 = vrot.slane %v1031_v36, 1  ;;  %v1308_v25 = vld [vmem:[%s3106_s1 + $0x14] sm:$0x1] }
 0xb45   :  { %v1041_v37 = vsel %vm81_vm1, %v1040_v33, %v1024_v31  ;;  %v1309_v6 = vld [vmem:[%s3106_s1 + $0x1c] sm:$0x1]  ;;  %v1310_v30 = vld [vmem:[%s3106_s1 + $0x24] sm:$0x1]  ;;  %v1311_v31 = vld [vmem:[%s3106_s1 + $0x2c] sm:$0x1] }
 0xb46   :  { %v1043_v39 = vsel %vm84_vm2, %v1042_v34, %v1041_v37  ;;  %v1312_v32 = vld [vmem:[%s3106_s1 + $0x34] sm:$0x1]  ;;  %v1313_v37 = vld [vmem:[%s3106_s1 + $0x3c] sm:$0x1] }
 0xb47   :  { %v1045_v42 = vsel %vm87_vm3, %v1044_v38, %v1043_v39 }
 0xb48   :  { %v1047_v45 = vsel %vm90_vm4, %v1046_v40, %v1045_v42 }
 0xb49   :  { %v1049_v47 = vsel %vm93_vm5, %v1048_v43, %v1047_v45 }
 0xb4a   :  { %v1051_v27 = vsel %vm96_vm6, %v1050_v46, %v1049_v47 }
 0xb4b   :  { %v2687_v52 = vsel %vm99_vm7, %v1052_v49, %v1051_v27 }
 0xb4c   :  { %v1055_v53 = vsel %vm106_vm8, %v2687_v52, %v2684_v51 }
 0xb4d   :  { %2120 = vmatmul.mubr.msk.f32.vlgmr.msra.gmra.mrb[6].mxu1 %vm108_vm9, %v1055_v53 }
 0xb4e   :  { %2256 = vmatpush3.bf16.msra.mxu1 %v2476_v59  ;;  %2156 = vmatprep.mubr.msk.f32.mxu1 %vm2335_vm0, %v2336_v8 }
 0xb4f   :  { %2257 = vmatprep.subr.bf16.mxu1 %v2333_v1 }
 0xb52   :  { %2259 = vmatpush3.bf16.msra.mxu1 %v2482_v61 }
 0xb53   :  { %2260 = vmatprep.subr.bf16.mxu1 %v2333_v1 }
 0xc20   :  { %v1125_v54 = vpop.f32.mrb[6].mxu1 }
 0xc21   :  { %v1126_v55 = vadd.f32 %v2460_v44, %v1125_v54  ;;  %v2121_v56 = vpop.f32.mrb[7].mxu1 }
 0xc23   :  { %1136 = vrot.lane.b32.xlu1 %v1126_v55, %s2337_s0  ;;  %v1949_v57 = vmul.f32 -1.442695, %v1126_v55 }
 0xc25   :  { %2302 = vpow2.f32 %v1949_v57 }
 0xc2f   :  { %v2303_v58 = vpop.eup %2302 }
 0xc30   :  { %v1132_v60 = vadd.f32 1.0, %v2303_v58 }
 0xc32   :  { %2304 = vrcp.f32 %v1132_v60 }
 0xc3c   :  { %v2305_v62 = vpop.eup %2304 }
 0xc3d   :  { %v1146_v14 = vsub.f32 1.0, %v2305_v62  ;;  %v1152_v16 = vmul.f32 %v2305_v62, %v2635_v48 }
 0xc95   :  { %v1137_v63 = vpop.permute.xlu1 %1136 }
 0xc96   :  { %v1139_v3 = vmul.f32 %v2305_v62, %v1137_v63 }
 0xc98   :  { %1141 = vrot.lane.b32.xlu0 %v1139_v3, %s2338_s3 }
 0xd0a   :  { %v1142_v5 = vpop.permute.xlu0 %1141 }
 0xd0b   :  { %v1144_v9 = vadd.f32 %v1142_v5, %v1126_v55 }
 0xd0d   :  { %2306 = vtanh.f32 %v1144_v9 }
 0xd17   :  { %v2307_v12 = vpop.eup %2306 }
 0xd18   :  { %1148 = vrot.lane.b32.xlu1 %v2307_v12, %s2339_s12 }
 0xd8a   :  { %v1149_v15 = vpop.permute.xlu1 %1148 }
 0xd8b   :  { %v1151_v17 = vmul.f32 %v1149_v15, %v1146_v14 }
 0xd8d   :  { %v2704_v18 = vadd.f32 %v1152_v16, %v1151_v17 }
 0xd8f   :  { %1230 = vrot.lane.b32.xlu1 %v2704_v18, %s2340_s4  ;;  %1155 = vrot.lane.b32.xlu0 %v2704_v18, %s2339_s12 }
 0xe01   :  { %v1156_v19 = vpop.permute.xlu0 %1155 }
 0xe02   :  { %2131 = vmatmul.mubr.msk.f32.vlgmr.msra.gmra.mrb[6].mxu0 %vm213_vm10, %v1156_v19 }
 0xe03   :  { %2247 = vmatpush3.bf16.msra.mxu0 %v2391_v4  ;;  %2145 = vmatprep.mubr.msk.f32.mxu0 %vm2335_vm0, %v2336_v8 }
 0xe04   :  { %2248 = vmatprep.subr.bf16.mxu0 %v2333_v1 }
 0xe07   :  { %2250 = vmatpush3.bf16.msra.mxu0 %v2400_v7 }
 0xe08   :  { %2251 = vmatprep.subr.bf16.mxu0 %v2333_v1 }
 0xe0b   :  { %2253 = vmatpush3.bf16.msra.mxu0 %v2414_v11 }
 0xe0c   :  { %2269 = vmatprep.subr.bf16.mxu0 %v2333_v1 }
 0xed5   :  { %v1225_v48 = vpop.f32.mrb[6].mxu0 }
 0xed6   :  { %v2720_v20 = vadd.f32 %v2510_v10, %v1225_v48  ;;  %v2132_v21 = vpop.f32.mrb[7].mxu0 }
 0xed8   :  { %v1305_v23 = vmax.f32 %v2720_v20, 0.0 }
 0xeda   :  { %v1315_v33 = vrot.slane %v1305_v23, 1  ;;  %v1316_v34 = vrot.slane %v1305_v23, 2  ;;  %v1317_v35 = vrot.slane %v1305_v23, 3  ;;  %v1318_v36 = vrot.slane %v1305_v23, 4 }
 0xedb   :  { %v1319_v38 = vrot.slane %v1305_v23, 5  ;;  %v1320_v39 = vrot.slane %v1305_v23, 6  ;;  %v1321_v40 = vrot.slane %v1305_v23, 7  ;;  %v1330_v42 = vadd.f32 %v1306_v22, %v1305_v23 }
 0xedc   :  { %v1331_v43 = vadd.f32 %v1315_v33, %v1307_v24  ;;  %v1332_v45 = vadd.f32 %v1316_v34, %v1308_v25  ;;  %v1333_v46 = vadd.f32 %v1317_v35, %v1309_v6  ;;  %v1334_v47 = vadd.f32 %v1318_v36, %v1310_v30  ;;  %v2753_v24 = vpop.permute.xlu1 %1230 }
 0xedd   :  { %v1335_v49 = vadd.f32 %v1319_v38, %v1311_v31  ;;  %v1336_v27 = vadd.f32 %v1320_v39, %v1312_v32  ;;  %v1337_v53 = vadd.f32 %v1321_v40, %v1313_v37  ;;  %v1338_v58 = vmul.f32 0.5, %v1330_v42 }
 0xede   :  { %v1339_v54 = vmul.f32 0.5, %v1331_v43  ;;  %v1340_v55 = vmul.f32 0.5, %v1332_v45  ;;  %v1341_v56 = vmul.f32 0.5, %v1333_v46  ;;  %v1342_v57 = vmul.f32 0.5, %v1334_v47 }
 0xedf   :  { %v1343_v60 = vmul.f32 0.5, %v1335_v49  ;;  %v1344_v3 = vmul.f32 0.5, %v1336_v27  ;;  %v1345_v5 = vmul.f32 0.5, %v1337_v53 }
 0xee0   :  { %v1354_v62 = vrot.slane %v1339_v54, 7  ;;  %v1356_v63 = vrot.slane %v1340_v55, 6  ;;  %v1358_v12 = vrot.slane %v1341_v56, 5  ;;  %v1360_v15 = vrot.slane %v1342_v57, 4  ;;  %v1626_v54 = vld [vmem:[%s3106_s1 + $0x35] sm:$0x1] }
 0xee1   :  { %v1362_v17 = vrot.slane %v1343_v60, 3  ;;  %v1364_v48 = vrot.slane %v1344_v3, 2  ;;  %v1366_v22 = vrot.slane %v1345_v5, 1  ;;  %v1627_v60 = vld [vmem:[%s3106_s1 + $0x3d] sm:$0x1] }
 0xee2   :  { %v1355_v9 = vsel %vm81_vm1, %v1354_v62, %v1338_v58 }
 0xee3   :  { %v1357_v14 = vsel %vm84_vm2, %v1356_v63, %v1355_v9 }
 0xee4   :  { %v1359_v16 = vsel %vm87_vm3, %v1358_v12, %v1357_v14 }
 0xee5   :  { %v1361_v19 = vsel %vm90_vm4, %v1360_v15, %v1359_v16 }
 0xee6   :  { %v1363_v21 = vsel %vm93_vm5, %v1362_v17, %v1361_v19 }
 0xee7   :  { %v1365_v23 = vsel %vm96_vm6, %v1364_v48, %v1363_v21 }
 0xee8   :  { %v2756_v25 = vsel %vm99_vm7, %v1366_v22, %v1365_v23 }
 0xee9   :  { %v1369_v6 = vsel %vm106_vm8, %v2756_v25, %v2753_v24 }
 0xeea   :  { %2146 = vmatmul.mubr.msk.f32.vlgmr.msra.gmra.mrb[8].mxu0 %vm108_vm9, %v1369_v6 }
 0xeeb   :  { %2271 = vmatpush3.bf16.msra.mxu0 %v2476_v59  ;;  %2182 = vmatprep.mubr.msk.f32.mxu0 %vm2335_vm0, %v2336_v8 }
 0xeec   :  { %2272 = vmatprep.subr.bf16.mxu0 %v2333_v1 }
 0xeef   :  { %2274 = vmatpush3.bf16.msra.mxu0 %v2482_v61 }
 0xfbd   :  { %v1439_v30 = vpop.f32.mrb[8].mxu0 }
 0xfbe   :  { %v1440_v31 = vadd.f32 %v2460_v44, %v1439_v30  ;;  %v2147_v32 = vpop.f32.mrb[9].mxu0 }
 0xfc0   :  { %1450 = vrot.lane.b32.xlu0 %v1440_v31, %s2337_s0  ;;  %v1952_v33 = vmul.f32 -1.442695, %v1440_v31 }
 0xfc2   :  { %2308 = vpow2.f32 %v1952_v33 }
 0xfcc   :  { %v2309_v34 = vpop.eup %2308 }
 0xfcd   :  { %v1446_v35 = vadd.f32 1.0, %v2309_v34 }
 0xfcf   :  { %2310 = vrcp.f32 %v1446_v35 }
 0xfd9   :  { %v2311_v36 = vpop.eup %2310 }
 0xfda   :  { %v1460_v40 = vsub.f32 1.0, %v2311_v36  ;;  %v1466_v43 = vmul.f32 %v2311_v36, %v2704_v18 }
0x1032   :  { %v1451_v59 = vpop.permute.xlu0 %1450 }
0x1033   :  { %v1453_v37 = vmul.f32 %v2311_v36, %v1451_v59 }
0x1035   :  { %1455 = vrot.lane.b32.xlu1 %v1453_v37, %s2338_s3 }
0x10a7   :  { %v1456_v38 = vpop.permute.xlu1 %1455 }
0x10a8   :  { %v1458_v39 = vadd.f32 %v1456_v38, %v1440_v31 }
0x10aa   :  { %2312 = vtanh.f32 %v1458_v39 }
0x10b4   :  { %v2313_v61 = vpop.eup %2312 }
0x10b5   :  { %1462 = vrot.lane.b32.xlu0 %v2313_v61, %s2339_s12 }
0x1127   :  { %v1463_v42 = vpop.permute.xlu0 %1462 }
0x1128   :  { %v1465_v45 = vmul.f32 %v1463_v42, %v1460_v40 }
0x112a   :  { %v2772_v46 = vadd.f32 %v1466_v43, %v1465_v45 }
0x112c   :  { %1544 = vrot.lane.b32.xlu0 %v2772_v46, %s2340_s4  ;;  %1469 = vrot.lane.b32.xlu1 %v2772_v46, %s2339_s12 }
0x119e   :  { %v1470_v47 = vpop.permute.xlu1 %1469 }
0x119f   :  { %2157 = vmatmul.mubr.msk.f32.vlgmr.msra.gmra.mrb[8].mxu1 %vm213_vm10, %v1470_v47  ;;  %v2820_v47 = vpop.permute.xlu0 %1544 }
0x11a0   :  { %2262 = vmatpush3.bf16.msra.mxu1 %v2391_v4  ;;  %2171 = vmatprep.mubr.msk.f32.mxu1 %vm2335_vm0, %v2336_v8  ;;  %v1620_v4 = vld [vmem:[%s3106_s1 + $0x5] sm:$0x1]  ;;  %v1621_v8 = vld [vmem:[%s3106_s1 + $0xd] sm:$0x1] }
0x11a1   :  { %2263 = vmatprep.subr.bf16.mxu1 %v2333_v1 }
0x11a4   :  { %2265 = vmatpush3.bf16.msra.mxu1 %v2400_v7  ;;  %v1623_v7 = vld [vmem:[%s3106_s1 + $0x1d] sm:$0x1] }
0x11a5   :  { %2266 = vmatprep.subr.bf16.mxu1 %v2333_v1  ;;  %v1622_v1 = vld [vmem:[%s3106_s1 + $0x15] sm:$0x1] }
0x11a8   :  { %2268 = vmatpush3.bf16.msra.mxu1 %v2414_v11  ;;  %v1624_v11 = vld [vmem:[%s3106_s1 + $0x25] sm:$0x1] }
0x1272   :  { %v1539_v18 = vpop.f32.mrb[8].mxu1 }
0x1273   :  { %v2787_v49 = vadd.f32 %v2510_v10, %v1539_v18  ;;  %v2158_v27 = vpop.f32.mrb[9].mxu1  ;;  %v1625_v10 = vld [vmem:[%s3106_s1 + $0x2d] sm:$0x1] }
0x1275   :  { %v1619_v53 = vmax.f32 %v2787_v49, 0.0 }
0x1277   :  { %v1629_v55 = vrot.slane %v1619_v53, 1  ;;  %v1630_v56 = vrot.slane %v1619_v53, 2  ;;  %v1631_v57 = vrot.slane %v1619_v53, 3  ;;  %v1632_v58 = vrot.slane %v1619_v53, 4 }
0x1278   :  { %v1633_v62 = vrot.slane %v1619_v53, 5  ;;  %v1634_v63 = vrot.slane %v1619_v53, 6  ;;  %v1635_v3 = vrot.slane %v1619_v53, 7  ;;  %v1644_v5 = vadd.f32 %v1620_v4, %v1619_v53 }
0x1279   :  { %v1645_v9 = vadd.f32 %v1629_v55, %v1621_v8  ;;  %v1646_v12 = vadd.f32 %v1630_v56, %v1622_v1  ;;  %v1647_v14 = vadd.f32 %v1631_v57, %v1623_v7  ;;  %v1648_v15 = vadd.f32 %v1632_v58, %v1624_v11 }
0x127a   :  { %v1649_v16 = vadd.f32 %v1633_v62, %v1625_v10  ;;  %v1650_v17 = vadd.f32 %v1634_v63, %v1626_v54  ;;  %v1651_v19 = vadd.f32 %v1635_v3, %v1627_v60  ;;  %v1652_v6 = vmul.f32 0.5, %v1644_v5 }
0x127b   :  { %v1653_v48 = vmul.f32 0.5, %v1645_v9  ;;  %v1654_v21 = vmul.f32 0.5, %v1646_v12  ;;  %v1655_v22 = vmul.f32 0.5, %v1647_v14  ;;  %v1656_v23 = vmul.f32 0.5, %v1648_v15 }
0x127c   :  { %v1657_v30 = vmul.f32 0.5, %v1649_v16  ;;  %v1658_v33 = vmul.f32 0.5, %v1650_v17  ;;  %v1659_v34 = vmul.f32 0.5, %v1651_v19  ;;  %v2341_v62 = vmov 1966171168  }
0x127d   :  { %v1668_v31 = vrot.slane %v1653_v48, 7  ;;  %v1670_v32 = vrot.slane %v1654_v21, 6  ;;  %v1672_v36 = vrot.slane %v1655_v22, 5  ;;  %v1674_v37 = vrot.slane %v1656_v23, 4 }
0x127e   :  { %v1676_v39 = vrot.slane %v1657_v30, 3  ;;  %v1678_v40 = vrot.slane %v1658_v33, 2  ;;  %v1680_v43 = vrot.slane %v1659_v34, 1  ;;  %v299_v63 = vunpack.c.l.s4 %v2341_v62 }
0x127f   :  { %v1669_v35 = vsel %vm81_vm1, %v1668_v31, %v1652_v6  ;;  %v301_v3 = vlaneseq  ;;  %v609_v17 = vsel %vm106_vm8, %v2549_v2, %v2615_v26  ;;  %v1237_v21 = vsel %vm106_vm8, %v2687_v52, %v2753_v24 }
0x1280   :  { %v1671_v59 = vsel %vm84_vm2, %v1670_v32, %v1669_v35  ;;  %v300_v5 = vunpack.c.0.s8 %v299_v63 }
0x1281   :  { %v1673_v38 = vsel %vm87_vm3, %v1672_v36, %v1671_v59  ;;  %v302_v9 = vshrl.u32 %v301_v3, 7 }
0x1282   :  { %v1675_v61 = vsel %vm90_vm4, %v1674_v37, %v1673_v38 }
0x1283   :  { %v1677_v42 = vsel %vm93_vm5, %v1676_v39, %v1675_v61  ;;  %v2840_v15 = vsub.s32 %v300_v5, %v302_v9  ;;  %v1551_v5 = vsel %vm106_vm8, %v2756_v25, %v2820_v47 }
0x1284   :  { %v1679_v45 = vsel %vm96_vm6, %v1678_v40, %v1677_v42 }
0x1285   :  { %v2823_v18 = vsel %vm99_vm7, %v1680_v43, %v1679_v45 }
0x1286   :  { %v1683_v27 = vsel %vm106_vm8, %v2823_v18, %v2820_v47 }
0x1287   :  { %2172 = vmatmul.mubr.msk.f32.vlgmr.msra.gmra.mrb[10].mxu1 %vm108_vm9, %v1683_v27 }
0x135a   :  { %v1753_v4 = vpop.f32.mrb[10].mxu1 }
0x135b   :  { %v1754_v53 = vadd.f32 %v2460_v44, %v1753_v4  ;;  %v2173_v8 = vpop.f32.mrb[11].mxu1 }
0x135d   :  { %1764 = vrot.lane.b32.xlu1 %v1754_v53, %s2337_s0  ;;  %v1955_v1 = vmul.f32 -1.442695, %v1754_v53 }
0x135f   :  { %2314 = vpow2.f32 %v1955_v1 }
0x1369   :  { %v2315_v7 = vpop.eup %2314 }
0x136a   :  { %v1760_v11 = vadd.f32 1.0, %v2315_v7  ;;  %v294_v7 = vsel %vm106_vm8, %v2450_v41, %v2546_v0 }
0x136c   :  { %2316 = vrcp.f32 %v1760_v11 }
0x1376   :  { %v2317_v10 = vpop.eup %2316 }
0x1377   :  { %v1774_v12 = vsub.f32 1.0, %v2317_v10 }
0x13cf   :  { %v1765_v54 = vpop.permute.xlu1 %1764 }
0x13d0   :  { %v1767_v55 = vmul.f32 %v2317_v10, %v1765_v54 }
0x13d2   :  { %1769 = vrot.lane.b32.xlu0 %v1767_v55, %s2338_s3 }
0x1444   :  { %v1770_v56 = vpop.permute.xlu0 %1769 }
0x1445   :  { %v1772_v57 = vadd.f32 %v1770_v56, %v1754_v53  ;;  %v923_v56 = vsel %vm106_vm8, %v2618_v28, %v2684_v51 }
0x1447   :  { %2318 = vtanh.f32 %v1772_v57 }
0x1448   :  { %2320 = vtanh.f32 %v2582_v29 }
0x1449   :  { %2322 = vtanh.f32 %v2720_v20  ;;  %v1780_v20 = vmul.f32 %v2317_v10, %v2772_v46 }
0x144a   :  { %2324 = vtanh.f32 %v2513_v13 }
0x144b   :  { %2326 = vtanh.f32 %v2651_v50 }
0x144c   :  { %2328 = vtanh.f32 %v2787_v49 }
0x1451   :  { %v2319_v44 = vpop.eup %2318 }
0x1452   :  { %1776 = vrot.lane.b32.xlu1 %v2319_v44, %s2339_s12  ;;  %v2321_v58 = vpop.eup %2320 }
0x1453   :  { %v2323_v60 = vpop.eup %2322 }
0x1454   :  { %v2325_v50 = vpop.eup %2324 }
0x1455   :  { %v2327_v33 = vpop.eup %2326 }
0x1456   :  { %606 = vrot.lane.b32.xlu1 %v2321_v58, %s2337_s0  ;;  %v2329_v45 = vpop.eup %2328 }
0x145a   :  { %1234 = vrot.lane.b32.xlu1 %v2323_v60, %s2337_s0 }
0x14c4   :  { %v1777_v29 = vpop.permute.xlu1 %1776 }
0x14c5   :  { %v1779_v14 = vmul.f32 %v1777_v29, %v1774_v12 }
0x14c7   :  { %v1781_v16 = vadd.f32 %v1780_v20, %v1779_v14 }
0x14c8   :  { %v607_v19 = vpop.permute.xlu1 %606 }
0x14c9   :  { %v610_v48 = vsel %vm108_vm9, %v609_v17, %v607_v19  ;;  %1858 = vrot.lane.b32.xlu1 %v1781_v16, %s2340_s4  ;;  %1783 = vrot.lane.b32.xlu0 %v1781_v16, %s2339_s12 }
0x14ca   :  { %v612_v13 = vcombine.high %v610_v48, %v610_v48  ;;  %v619_v46 = vrot.slane %v610_v48, %v2840_v15 }
0x14cc   :  { %v626_v2 = vrot.slane %v612_v13, %v2840_v15  ;;  %v627_v26 = vcombine.high %v619_v46, %v619_v46  ;;  %v635_v22 = vrot.slane %v619_v46, %v2840_v15  ;;  %v1235_v23 = vpop.permute.xlu1 %1234 }
0x14cd   :  { %v1238_v6 = vsel %vm108_vm9, %v1237_v21, %v1235_v23  ;;  %291 = vrot.lane.b32.xlu0 %v2325_v50, %s2337_s0 }
0x14ce   :  { %v628_v49 = vcombine.high %v626_v2, %v626_v2  ;;  %v642_v30 = vrot.slane %v626_v2, %v2840_v15  ;;  %v649_v31 = vrot.slane %v627_v26, %v2840_v15  ;;  %v657_v32 = vcombine.high %v635_v22, %v635_v22  ;;  %669 = vst.msk [vmem:[%s3110_s6 + $0x1] sm:$0x1] %vm354_vm11, %v635_v22 }
0x14cf   :  { %v1240_v52 = vcombine.high %v1238_v6, %v1238_v6  ;;  %v1247_v24 = vrot.slane %v1238_v6, %v2840_v15 }
0x14d0   :  { %v656_v34 = vrot.slane %v628_v49, %v2840_v15  ;;  %v658_v35 = vcombine.high %v642_v30, %v642_v30  ;;  %v659_v36 = vcombine.high %v649_v31, %v649_v31  ;;  %670 = vst.msk [vmem:[%s3110_s6 + $0x9] sm:$0x1] %vm354_vm11, %v649_v31  ;;  %671 = vst.msk [vmem:[%s3110_s6 + $0x11] sm:$0x1] %vm354_vm11, %v657_v32 }
0x14d1   :  { %673 = vst.msk [vmem:[%s3110_s6 + $0x21] sm:$0x1] %vm354_vm11, %v642_v30  ;;  %v1254_v59 = vrot.slane %v1240_v52, %v2840_v15  ;;  %v1255_v37 = vcombine.high %v1247_v24, %v1247_v24  ;;  %v1263_v38 = vrot.slane %v1247_v24, %v2840_v15  ;;  %920 = vrot.lane.b32.xlu0 %v2327_v33, %s2337_s0 }
0x14d2   :  { %v660_v39 = vcombine.high %v656_v34, %v656_v34  ;;  %672 = vst.msk [vmem:[%s3110_s6 + $0x19] sm:$0x1] %vm354_vm11, %v659_v36  ;;  %674 = vst.msk [vmem:[%s3110_s6 + $0x29] sm:$0x1] %vm354_vm11, %v656_v34 }
0x14d3   :  { %675 = vst.msk [vmem:[%s3110_s6 + $0x31] sm:$0x1] %vm354_vm11, %v658_v35  ;;  %v1256_v61 = vcombine.high %v1254_v59, %v1254_v59  ;;  %v1270_v40 = vrot.slane %v1254_v59, %v2840_v15  ;;  %v1277_v42 = vrot.slane %v1255_v37, %v2840_v15  ;;  %v1285_v43 = vcombine.high %v1263_v38, %v1263_v38  ;;  %v2332_v37 = vld [vmem:[%s3109_s5] ss:$0 sm:$0xff] }
0x14d4   :  { %1297 = vst.msk [vmem:[%s3110_s6 + $0x3] sm:$0x1] %vm354_vm11, %v1263_v38  ;;  %676 = vst.msk [vmem:[%s3110_s6 + $0x39] sm:$0x1] %vm354_vm11, %v660_v39 }
0x14d5   :  { %v1284_v27 = vrot.slane %v1256_v61, %v2840_v15  ;;  %v1286_v4 = vcombine.high %v1270_v40, %v1270_v40  ;;  %v1287_v53 = vcombine.high %v1277_v42, %v1277_v42  ;;  %1298 = vst.msk [vmem:[%s3110_s6 + $0xb] sm:$0x1] %vm354_vm11, %v1277_v42  ;;  %1299 = vst.msk [vmem:[%s3110_s6 + $0x13] sm:$0x1] %vm354_vm11, %v1285_v43  ;;  %1548 = vrot.lane.b32.xlu0 %v2329_v45, %s2337_s0 }
0x14d6   :  { %1301 = vst.msk [vmem:[%s3110_s6 + $0x23] sm:$0x1] %vm354_vm11, %v1270_v40 }
0x14d7   :  { %v1288_v8 = vcombine.high %v1284_v27, %v1284_v27  ;;  %1300 = vst.msk [vmem:[%s3110_s6 + $0x1b] sm:$0x1] %vm354_vm11, %v1287_v53  ;;  %1302 = vst.msk [vmem:[%s3110_s6 + $0x2b] sm:$0x1] %vm354_vm11, %v1284_v27 }
0x14d8   :  { %1303 = vst.msk [vmem:[%s3110_s6 + $0x33] sm:$0x1] %vm354_vm11, %v1286_v4 }
0x14d9   :  { %1304 = vst.msk [vmem:[%s3110_s6 + $0x3b] sm:$0x1] %vm354_vm11, %v1288_v8 }
0x153b   :  { %v1784_v1 = vpop.permute.xlu0 %1783  ;;  %v1859_v40 = vpop.permute.xlu1 %1858 }
0x153c   :  { %2183 = vmatmul.mubr.msk.f32.vlgmr.msra.gmra.mrb[10].mxu0 %vm213_vm10, %v1784_v1  ;;  %v1865_v42 = vsel %vm106_vm8, %v2823_v18, %v1859_v40 }
0x153f   :  { %v292_v11 = vpop.permute.xlu0 %291 }
0x1540   :  { %v295_v10 = vsel %vm108_vm9, %v294_v7, %v292_v11 }
0x1541   :  { %v297_v54 = vcombine.high %v295_v10, %v295_v10  ;;  %v304_v55 = vrot.slane %v295_v10, %v2840_v15 }
0x1543   :  { %v311_v57 = vrot.slane %v297_v54, %v2840_v15  ;;  %v312_v44 = vcombine.high %v304_v55, %v304_v55  ;;  %v320_v58 = vrot.slane %v304_v55, %v2840_v15  ;;  %v921_v60 = vpop.permute.xlu0 %920 }
0x1544   :  { %v924_v62 = vsel %vm108_vm9, %v923_v56, %v921_v60 }
0x1545   :  { %v313_v63 = vcombine.high %v311_v57, %v311_v57  ;;  %v327_v41 = vrot.slane %v311_v57, %v2840_v15  ;;  %v334_v0 = vrot.slane %v312_v44, %v2840_v15  ;;  %v342_v3 = vcombine.high %v320_v58, %v320_v58  ;;  %355 = vst.msk [vmem:[%s3110_s6] sm:$0x1] %vm354_vm11, %v320_v58 }
0x1546   :  { %v926_v28 = vcombine.high %v924_v62, %v924_v62  ;;  %v933_v51 = vrot.slane %v924_v62, %v2840_v15 }
0x1547   :  { %v341_v9 = vrot.slane %v313_v63, %v2840_v15  ;;  %v343_v12 = vcombine.high %v327_v41, %v327_v41  ;;  %v344_v29 = vcombine.high %v334_v0, %v334_v0  ;;  %356 = vst.msk [vmem:[%s3110_s6 + $0x8] sm:$0x1] %vm354_vm11, %v334_v0  ;;  %357 = vst.msk [vmem:[%s3110_s6 + $0x10] sm:$0x1] %vm354_vm11, %v342_v3  ;;  %v1549_v25 = vpop.permute.xlu0 %1548 }
0x1548   :  { %359 = vst.msk [vmem:[%s3110_s6 + $0x20] sm:$0x1] %vm354_vm11, %v327_v41  ;;  %v940_v47 = vrot.slane %v926_v28, %v2840_v15  ;;  %v941_v20 = vcombine.high %v933_v51, %v933_v51  ;;  %v949_v14 = vrot.slane %v933_v51, %v2840_v15  ;;  %v1552_v16 = vsel %vm108_vm9, %v1551_v5, %v1549_v25 }
0x1549   :  { %v345_v17 = vcombine.high %v341_v9, %v341_v9  ;;  %358 = vst.msk [vmem:[%s3110_s6 + $0x18] sm:$0x1] %vm354_vm11, %v344_v29  ;;  %360 = vst.msk [vmem:[%s3110_s6 + $0x28] sm:$0x1] %vm354_vm11, %v341_v9  ;;  %v1554_v19 = vcombine.high %v1552_v16, %v1552_v16  ;;  %v1561_v48 = vrot.slane %v1552_v16, %v2840_v15 }
0x154a   :  { %361 = vst.msk [vmem:[%s3110_s6 + $0x30] sm:$0x1] %vm354_vm11, %v343_v12  ;;  %v942_v13 = vcombine.high %v940_v47, %v940_v47  ;;  %v956_v46 = vrot.slane %v940_v47, %v2840_v15  ;;  %v963_v50 = vrot.slane %v941_v20, %v2840_v15  ;;  %v971_v21 = vcombine.high %v949_v14, %v949_v14 }
0x154b   :  { %983 = vst.msk [vmem:[%s3110_s6 + $0x2] sm:$0x1] %vm354_vm11, %v949_v14  ;;  %362 = vst.msk [vmem:[%s3110_s6 + $0x38] sm:$0x1] %vm354_vm11, %v345_v17  ;;  %v1568_v2 = vrot.slane %v1554_v19, %v2840_v15  ;;  %v1569_v26 = vcombine.high %v1561_v48, %v1561_v48  ;;  %v1577_v22 = vrot.slane %v1561_v48, %v2840_v15 }
0x154c   :  { %v970_v23 = vrot.slane %v942_v13, %v2840_v15  ;;  %v972_v6 = vcombine.high %v956_v46, %v956_v46  ;;  %v973_v49 = vcombine.high %v963_v50, %v963_v50  ;;  %984 = vst.msk [vmem:[%s3110_s6 + $0xa] sm:$0x1] %vm354_vm11, %v963_v50  ;;  %985 = vst.msk [vmem:[%s3110_s6 + $0x12] sm:$0x1] %vm354_vm11, %v971_v21 }
0x154d   :  { %987 = vst.msk [vmem:[%s3110_s6 + $0x22] sm:$0x1] %vm354_vm11, %v956_v46  ;;  %v1570_v30 = vcombine.high %v1568_v2, %v1568_v2  ;;  %v1584_v31 = vrot.slane %v1568_v2, %v2840_v15  ;;  %v1591_v32 = vrot.slane %v1569_v26, %v2840_v15  ;;  %v1599_v52 = vcombine.high %v1577_v22, %v1577_v22 }
0x154e   :  { %1611 = vst.msk [vmem:[%s3110_s6 + $0x4] sm:$0x1] %vm354_vm11, %v1577_v22  ;;  %v974_v24 = vcombine.high %v970_v23, %v970_v23  ;;  %986 = vst.msk [vmem:[%s3110_s6 + $0x1a] sm:$0x1] %vm354_vm11, %v973_v49 }
0x154f   :  { %988 = vst.msk [vmem:[%s3110_s6 + $0x2a] sm:$0x1] %vm354_vm11, %v970_v23  ;;  %989 = vst.msk [vmem:[%s3110_s6 + $0x32] sm:$0x1] %vm354_vm11, %v972_v6  ;;  %v1598_v33 = vrot.slane %v1570_v30, %v2840_v15  ;;  %v1600_v34 = vcombine.high %v1584_v31, %v1584_v31  ;;  %v1601_v35 = vcombine.high %v1591_v32, %v1591_v32 }
0x1550   :  { %1612 = vst.msk [vmem:[%s3110_s6 + $0xc] sm:$0x1] %vm354_vm11, %v1591_v32  ;;  %1613 = vst.msk [vmem:[%s3110_s6 + $0x14] sm:$0x1] %vm354_vm11, %v1599_v52 }
0x1551   :  { %1615 = vst.msk [vmem:[%s3110_s6 + $0x24] sm:$0x1] %vm354_vm11, %v1584_v31  ;;  %990 = vst.msk [vmem:[%s3110_s6 + $0x3a] sm:$0x1] %vm354_vm11, %v974_v24  ;;  %v1602_v36 = vcombine.high %v1598_v33, %v1598_v33 }
0x1552   :  { %1614 = vst.msk [vmem:[%s3110_s6 + $0x1c] sm:$0x1] %vm354_vm11, %v1601_v35  ;;  %1616 = vst.msk [vmem:[%s3110_s6 + $0x2c] sm:$0x1] %vm354_vm11, %v1598_v33 }
0x1553   :  { %1617 = vst.msk [vmem:[%s3110_s6 + $0x34] sm:$0x1] %vm354_vm11, %v1600_v34  ;;  %1618 = vst.msk [vmem:[%s3110_s6 + $0x3c] sm:$0x1] %vm354_vm11, %v1602_v36 }
0x160f   :  { %v1853_v59 = vpop.f32.mrb[10].mxu0 }
0x1610   :  { %v1854_v38 = vadd.f32 %v2332_v37, %v1853_v59  ;;  %v2184_v39 = vpop.f32.mrb[11].mxu0 }
0x1612   :  { %2330 = vtanh.f32 %v1854_v38 }
0x161c   :  { %v2331_v61 = vpop.eup %2330 }
0x161d   :  { %1862 = vrot.lane.b32.xlu1 %v2331_v61, %s2337_s0 }
0x168f   :  { %v1863_v43 = vpop.permute.xlu1 %1862 }
0x1690   :  { %v1866_v45 = vsel %vm108_vm9, %v1865_v42, %v1863_v43 }
0x1691   :  { %v1868_v27 = vcombine.high %v1866_v45, %v1866_v45  ;;  %v1875_v4 = vrot.slane %v1866_v45, %v2840_v15 }
0x1693   :  { %v1882_v53 = vrot.slane %v1868_v27, %v2840_v15  ;;  %v1883_v8 = vcombine.high %v1875_v4, %v1875_v4  ;;  %v1891_v1 = vrot.slane %v1875_v4, %v2840_v15 }
0x1695   :  { %v1884_v7 = vcombine.high %v1882_v53, %v1882_v53  ;;  %v1898_v11 = vrot.slane %v1882_v53, %v2840_v15  ;;  %v1905_v10 = vrot.slane %v1883_v8, %v2840_v15  ;;  %v1913_v54 = vcombine.high %v1891_v1, %v1891_v1  ;;  %1925 = vst.msk [vmem:[%s3110_s6 + $0x5] sm:$0x1] %vm354_vm11, %v1891_v1 }
0x1697   :  { %v1912_v18 = vrot.slane %v1884_v7, %v2840_v15  ;;  %v1914_v55 = vcombine.high %v1898_v11, %v1898_v11  ;;  %v1915_v56 = vcombine.high %v1905_v10, %v1905_v10  ;;  %1926 = vst.msk [vmem:[%s3110_s6 + $0xd] sm:$0x1] %vm354_vm11, %v1905_v10  ;;  %1927 = vst.msk [vmem:[%s3110_s6 + $0x15] sm:$0x1] %vm354_vm11, %v1913_v54 }
0x1698   :  { %1929 = vst.msk [vmem:[%s3110_s6 + $0x25] sm:$0x1] %vm354_vm11, %v1898_v11 }
0x1699   :  { %v1916_v57 = vcombine.high %v1912_v18, %v1912_v18  ;;  %1928 = vst.msk [vmem:[%s3110_s6 + $0x1d] sm:$0x1] %vm354_vm11, %v1915_v56  ;;  %1930 = vst.msk [vmem:[%s3110_s6 + $0x2d] sm:$0x1] %vm354_vm11, %v1912_v18 }
0x169a   :  { %1931 = vst.msk [vmem:[%s3110_s6 + $0x35] sm:$0x1] %vm354_vm11, %v1914_v55 }
0x169b   :  { %1932 = vst.msk [vmem:[%s3110_s6 + $0x3d] sm:$0x1] %vm354_vm11, %v1916_v57 }

</bundles_post_ra>
